<compile_context>
chip_gen: v7x
topology: tpu7x:2x2x1
jax: 0.10.0
libtpu: 0.0.40
codegen_flags: <defaults>
</compile_context>

<pallas_src>
import functools

import jax
import jax.numpy as jnp
from jax.experimental import pallas as pl
from jax.experimental.pallas import tpu as pltpu


def _round_up(x, m):
    return ((x + m - 1) // m) * m


def _vmem_limit_bytes():
    """~3/4 of physical VMEM (v5e/v6e: 128 MiB, v7x: 64 MiB), capped at 100 MiB."""
    cap = None
    try:
        cap = int(getattr(pltpu.get_tpu_info(), "vmem_capacity_bytes", 0)) or None
    except Exception:
        cap = None
    if cap is None:
        cap = 64 * 1024 * 1024  # conservative fallback = v7x physical VMEM
    return min((cap * 3) // 4, 100 * 1024 * 1024)


def _build_patch(x_ref, patch_ref, H, W, Cin):
    """Assemble the (H*W, 9*Cin) im2col patch for one padded image tile.

    x_ref:     (1, H+2, W+2, Cin) padded NHWC tile (compute dtype)
    patch_ref: (H*W, 9*Cin)       VMEM scratch (compute dtype)
    Column order is tap-major ((kh*3+kw)*Cin + c) to match the weight slab.
    """
    for kh in range(3):
        for kw in range(3):
            tap = kh * 3 + kw
            patch_ref[:, tap * Cin:(tap + 1) * Cin] = (
                x_ref[0, kh:kh + H, kw:kw + W, :].reshape(H * W, Cin))


def _conv_tile(x_ref, w_ref, patch_ref, H, W, Cin):
    """One fused K=9*Cin MXU matmul -> (H*W, Coutp) float32."""
    _build_patch(x_ref, patch_ref, H, W, Cin)
    return jnp.dot(patch_ref[...], w_ref[...],
                   preferred_element_type=jnp.float32)


# ---------------------------------------------------------------------------
# Sweep 1: per-channel sum / sum-of-squares of the conv output (global stats)
# ---------------------------------------------------------------------------
def _stats_kernel(x_ref, w_ref, sum_ref, sq_ref, patch_ref, *, H, W, Cin):
    @pl.when(pl.program_id(1) == 0)
    def _():
        sum_ref[...] = jnp.zeros_like(sum_ref)
        sq_ref[...] = jnp.zeros_like(sq_ref)

    y = _conv_tile(x_ref, w_ref, patch_ref, H, W, Cin)      # (H*W, Coutp) f32
    sum_ref[0] += jnp.sum(y, axis=0, keepdims=True)
    sq_ref[0] += jnp.sum(y * y, axis=0, keepdims=True)


# ---------------------------------------------------------------------------
# Sweep 2: recompute conv, apply folded affine (BN) + ReLU, store lane-dense
# ---------------------------------------------------------------------------
def _apply_kernel(x_ref, w_ref, scale_ref, shift_ref, o_ref, patch_ref,
                  *, H, W, Cin, Cout):
    y = _conv_tile(x_ref, w_ref, patch_ref, H, W, Cin)      # (H*W, Coutp) f32
    y = jnp.maximum(y * scale_ref[...] + shift_ref[...], 0.0)
    yt = jnp.transpose(y)                                   # (Coutp, H*W), XLU
    o_ref[0] = yt[:Cout, :].astype(o_ref.dtype)             # unpadded store


def dnconv_forward(x_nchw, w_oihw, bias, gamma, beta, eps=1e-5,
                   compute_dtype=jnp.float32):
    """Forward pass of DNConv (conv3x3 pad=1 -> BN(batch stats) -> ReLU).

    x_nchw : (N, Cin, H, W) float32
    w_oihw : (Cout, Cin, 3, 3) float32
    bias, gamma, beta : (Cout,) float32
    Returns: (N, Cout, H, W) float32
    """
    N, Cin, H, W = x_nchw.shape
    Cout = w_oihw.shape[0]
    HW = H * W
    Coutp = _round_up(Cout, 128)        # lane width of the in-VMEM conv tile only

    # --- input glue: NCHW -> padded NHWC (single fused XLA pass over x, the
    # smallest tensor here).
    # TODO(synk): with an NHWC-native surrounding model (or in-kernel halo
    # handling), this pass disappears entirely.
    x_nhwc = jnp.transpose(x_nchw, (0, 2, 3, 1))
    xp = jnp.pad(x_nhwc, ((0, 0), (1, 1), (1, 1), (0, 0))).astype(compute_dtype)

    # single (9*Cin, Coutp) weight slab, tap-major rows to match the patch
    w_slab = jnp.transpose(w_oihw, (2, 3, 1, 0)).reshape(9 * Cin, Cout)
    w_slab = jnp.pad(w_slab, ((0, 0), (0, Coutp - Cout))).astype(compute_dtype)

    vmem_limit = _vmem_limit_bytes()

    # --- sweep 1: global per-channel conv statistics -------------------------
    # Leading "parallel" axis -> per-core partial rows (v7x uses both TCs).
    ncores = 2 if (N % 2 == 0 and N >= 2) else 1
    npc = N // ncores
    stats_x_spec = pl.BlockSpec((1, H + 2, W + 2, Cin),
                                lambda c, n: (c * npc + n, 0, 0, 0))
    stats_w_spec = pl.BlockSpec((9 * Cin, Coutp), lambda c, n: (0, 0))
    stats_out_spec = pl.BlockSpec((1, 1, Coutp), lambda c, n: (c, 0, 0))

    part_sum, part_sq = pl.pallas_call(
        functools.partial(_stats_kernel, H=H, W=W, Cin=Cin),
        grid=(ncores, npc),
        in_specs=[stats_x_spec, stats_w_spec],
        out_specs=(stats_out_spec, stats_out_spec),
        out_shape=(jax.ShapeDtypeStruct((ncores, 1, Coutp), jnp.float32),
                   jax.ShapeDtypeStruct((ncores, 1, Coutp), jnp.float32)),
        scratch_shapes=[pltpu.VMEM((HW, 9 * Cin), compute_dtype)],
        compiler_params=pltpu.CompilerParams(
            dimension_semantics=("parallel", "arbitrary"),
            vmem_limit_bytes=vmem_limit),
    )(xp, w_slab)

    conv_sum = jnp.sum(part_sum, axis=(0, 1))               # (Coutp,)
    conv_sq = jnp.sum(part_sq, axis=(0, 1))

    # --- fold BN (batch stats) into one per-channel affine (f32, tiny) -------
    m = float(N * HW)
    mean_c = conv_sum / m
    # TODO(synk): E[y^2]-E[y]^2 in f32 can cancel for very large N*H*W or
    # large-magnitude activations; switch to a mean-first / Welford-style
    # accumulation if that regime matters.
    var = jnp.maximum(conv_sq / m - mean_c * mean_c, 0.0)
    gamma_p = jnp.pad(gamma.astype(jnp.float32), (0, Coutp - Cout))
    beta_p = jnp.pad(beta.astype(jnp.float32), (0, Coutp - Cout))
    scale = gamma_p * jax.lax.rsqrt(var + eps)
    # Conv bias cancels exactly under training-mode BN (mean_y = mean_c + bias),
    # so the folded epilogue is out = max(conv*scale + shift, 0).
    shift = beta_p - mean_c * scale
    del bias  # kept in the signature for interface parity with nn.Conv2d
    scale_row = scale.reshape(1, Coutp)
    shift_row = shift.reshape(1, Coutp)

    # --- sweep 2: conv recompute + affine + ReLU, unpadded lane-dense stores --
    app_x_spec = pl.BlockSpec((1, H + 2, W + 2, Cin), lambda n: (n, 0, 0, 0))
    app_w_spec = pl.BlockSpec((9 * Cin, Coutp), lambda n: (0, 0))
    row_spec = pl.BlockSpec((1, Coutp), lambda n: (0, 0))
    out_spec = pl.BlockSpec((1, Cout, HW), lambda n: (n, 0, 0))

    out = pl.pallas_call(
        functools.partial(_apply_kernel, H=H, W=W, Cin=Cin, Cout=Cout),
        grid=(N,),
        in_specs=[app_x_spec, app_w_spec, row_spec, row_spec],
        out_specs=out_spec,
        out_shape=jax.ShapeDtypeStruct((N, Cout, HW), jnp.float32),
        scratch_shapes=[pltpu.VMEM((HW, 9 * Cin), compute_dtype)],
        compiler_params=pltpu.CompilerParams(
            dimension_semantics=("parallel",),
            vmem_limit_bytes=vmem_limit),
    )(xp, w_slab, scale_row, shift_row)

    # Free reshape back to NCHW: output is already unpadded and channel-major.
    return out.reshape(N, Cout, H, W)


# ---------------------------------------------------------------------------
# Pure-JAX reference (matches PyTorch training-mode BN forward semantics)
# ---------------------------------------------------------------------------
def dnconv_reference(x, w_oihw, bias, gamma, beta, eps=1e-5):
    y = jax.lax.conv_general_dilated(
        x, w_oihw, window_strides=(1, 1), padding=((1, 1), (1, 1)),
        dimension_numbers=("NCHW", "OIHW", "NCHW"))
    y = y + bias[None, :, None, None]
    mean = jnp.mean(y, axis=(0, 2, 3), keepdims=True)
    var = jnp.mean((y - mean) ** 2, axis=(0, 2, 3), keepdims=True)
    yn = (y - mean) / jnp.sqrt(var + eps)
    return jnp.maximum(yn * gamma[None, :, None, None]
                       + beta[None, :, None, None], 0.0)


if __name__ == "__main__":
    # Small deterministic example consistent with DNConv(in_channels=4, out_channels=8)
    N, Cin, H, W = 2, 4, 16, 16
    Cout = 8

    key = jax.random.PRNGKey(0)
    kx, kw, kb = jax.random.split(key, 3)

    x = jax.random.normal(kx, (N, Cin, H, W), dtype=jnp.float32)

    # Conv2d default init: uniform(-1/sqrt(fan_in), 1/sqrt(fan_in)), fan_in = Cin*3*3
    fan_in = Cin * 3 * 3
    bound = 1.0 / (fan_in ** 0.5)
    w_oihw = jax.random.uniform(kw, (Cout, Cin, 3, 3), jnp.float32, -bound, bound)
    bias = jax.random.uniform(kb, (Cout,), jnp.float32, -bound, bound)

    # BatchNorm2d default init
    gamma = jnp.ones((Cout,), jnp.float32)
    beta = jnp.zeros((Cout,), jnp.float32)
    # TODO(synk): running_mean/running_var updates are training-time state and
    # do not affect the forward output; they are not modeled here.

    ref = dnconv_reference(x, w_oihw, bias, gamma, beta)

    # f32 path (exact-semantics check)
    out_f32 = jax.block_until_ready(
        dnconv_forward(x, w_oihw, bias, gamma, beta,
                       compute_dtype=jnp.float32))
    assert out_f32.shape == (N, Cout, H, W)
    assert jnp.allclose(out_f32, ref, atol=1e-4, rtol=1e-4), (
        float(jnp.max(jnp.abs(out_f32 - ref))))

    # bf16 matmul-input path (MXU-native on v5e/v6e/v7x); stats/affine stay f32.
    out_bf16 = jax.block_until_ready(
        dnconv_forward(x, w_oihw, bias, gamma, beta,
                       compute_dtype=jnp.bfloat16))
    assert out_bf16.shape == (N, Cout, H, W)
    assert jnp.allclose(out_bf16, ref, atol=5e-2, rtol=5e-2), (
        float(jnp.max(jnp.abs(out_bf16 - ref))))

    print("KERNEL_OK")
</pallas_src>

<mosaic_0001>
module attributes {stable_mosaic.version = 11 : i64} {
  func.func @_stats_kernel(%arg0: i32, %arg1: i32, %arg2: memref<1x18x18x4xf32, #tpu.memory_space<vmem>>, %arg3: memref<36x128xf32, #tpu.memory_space<vmem>>, %arg4: memref<1x1x128xf32, #tpu.memory_space<vmem>>, %arg5: memref<1x1x128xf32, #tpu.memory_space<vmem>>, %arg6: memref<256x36xf32, #tpu.memory_space<vmem>>) attributes {dimension_semantics = [#tpu.dimension_semantics<parallel>, #tpu.dimension_semantics<arbitrary>], iteration_bounds = array<i64: 2, 1>, scalar_prefetch = 0 : i64, scratch_operands = 1 : i64, tpu.core_type = #tpu.core_type<tc>, window_params = [{transform_indices = @transform_0, window_bounds = array<i64: 1, 18, 18, 4>}, {pipeline_mode = #tpu.pipeline_mode<synchronous>, transform_indices = @transform_1, window_bounds = array<i64: 36, 128>}, {transform_indices = @transform_2, window_bounds = array<i64: 1, 1, 128>}, {transform_indices = @transform_3, window_bounds = array<i64: 1, 1, 128>}]} {
    %c0_i32 = arith.constant 0 : i32
    %0 = arith.cmpi eq, %arg1, %c0_i32 : i32
    %1 = arith.extui %0 : i1 to i32
    %c0_i32_0 = arith.constant 0 : i32
    %2 = arith.cmpi ne, %1, %c0_i32_0 : i32
    scf.if %2 {
      %cst_62 = arith.constant 0.000000e+00 : f32
      %59 = vector.broadcast %cst_62 : f32 to vector<1x1x128xf32>
      %c0_63 = arith.constant 0 : index
      %c0_64 = arith.constant 0 : index
      %c0_65 = arith.constant 0 : index
      %60 = vector.load %arg4[%c0_63, %c0_64, %c0_65] : memref<1x1x128xf32, #tpu.memory_space<vmem>>, vector<1x1x128xf32>
      tpu.vector_store %arg4[%c0_63, %c0_64, %c0_65], %59 {strides = array<i32>} : memref<1x1x128xf32, #tpu.memory_space<vmem>>, vector<1x1x128xf32>,
      %cst_66 = arith.constant 0.000000e+00 : f32
      %61 = vector.broadcast %cst_66 : f32 to vector<1x1x128xf32>
      %c0_67 = arith.constant 0 : index
      %c0_68 = arith.constant 0 : index
      %c0_69 = arith.constant 0 : index
      %62 = vector.load %arg5[%c0_67, %c0_68, %c0_69] : memref<1x1x128xf32, #tpu.memory_space<vmem>>, vector<1x1x128xf32>
      tpu.vector_store %arg5[%c0_67, %c0_68, %c0_69], %61 {strides = array<i32>} : memref<1x1x128xf32, #tpu.memory_space<vmem>>, vector<1x1x128xf32>,
    } else {
    }
    %c0 = arith.constant 0 : index
    %c0_1 = arith.constant 0 : index
    %c0_2 = arith.constant 0 : index
    %c0_3 = arith.constant 0 : index
    %3 = vector.load %arg2[%c0, %c0_1, %c0_2, %c0_3] : memref<1x18x18x4xf32, #tpu.memory_space<vmem>>, vector<1x16x16x4xf32>
    %4 = vector.shape_cast %3 : vector<1x16x16x4xf32> to vector<16x16x4xf32>
    %5 = vector.shape_cast %4 : vector<16x16x4xf32> to vector<256x4xf32>
    %c0_4 = arith.constant 0 : index
    %c0_5 = arith.constant 0 : index
    %6 = vector.load %arg6[%c0_4, %c0_5] : memref<256x36xf32, #tpu.memory_space<vmem>>, vector<256x4xf32>
    tpu.vector_store %arg6[%c0_4, %c0_5], %5 {strides = array<i32>} : memref<256x36xf32, #tpu.memory_space<vmem>>, vector<256x4xf32>,
    %c0_6 = arith.constant 0 : index
    %c0_7 = arith.constant 0 : index
    %c1 = arith.constant 1 : index
    %c0_8 = arith.constant 0 : index
    %7 = vector.load %arg2[%c0_6, %c0_7, %c1, %c0_8] : memref<1x18x18x4xf32, #tpu.memory_space<vmem>>, vector<1x16x16x4xf32>
    %8 = vector.shape_cast %7 : vector<1x16x16x4xf32> to vector<16x16x4xf32>
    %9 = vector.shape_cast %8 : vector<16x16x4xf32> to vector<256x4xf32>
    %c0_9 = arith.constant 0 : index
    %c4 = arith.constant 4 : index
    %10 = vector.load %arg6[%c0_9, %c4] : memref<256x36xf32, #tpu.memory_space<vmem>>, vector<256x4xf32>
    tpu.vector_store %arg6[%c0_9, %c4], %9 {strides = array<i32>} : memref<256x36xf32, #tpu.memory_space<vmem>>, vector<256x4xf32>,
    %c0_10 = arith.constant 0 : index
    %c0_11 = arith.constant 0 : index
    %c2 = arith.constant 2 : index
    %c0_12 = arith.constant 0 : index
    %11 = vector.load %arg2[%c0_10, %c0_11, %c2, %c0_12] : memref<1x18x18x4xf32, #tpu.memory_space<vmem>>, vector<1x16x16x4xf32>
    %12 = vector.shape_cast %11 : vector<1x16x16x4xf32> to vector<16x16x4xf32>
    %13 = vector.shape_cast %12 : vector<16x16x4xf32> to vector<256x4xf32>
    %c0_13 = arith.constant 0 : index
    %c8 = arith.constant 8 : index
    %14 = vector.load %arg6[%c0_13, %c8] : memref<256x36xf32, #tpu.memory_space<vmem>>, vector<256x4xf32>
    tpu.vector_store %arg6[%c0_13, %c8], %13 {strides = array<i32>} : memref<256x36xf32, #tpu.memory_space<vmem>>, vector<256x4xf32>,
    %c0_14 = arith.constant 0 : index
    %c1_15 = arith.constant 1 : index
    %c0_16 = arith.constant 0 : index
    %c0_17 = arith.constant 0 : index
    %15 = vector.load %arg2[%c0_14, %c1_15, %c0_16, %c0_17] : memref<1x18x18x4xf32, #tpu.memory_space<vmem>>, vector<1x16x16x4xf32>
    %16 = vector.shape_cast %15 : vector<1x16x16x4xf32> to vector<16x16x4xf32>
    %17 = vector.shape_cast %16 : vector<16x16x4xf32> to vector<256x4xf32>
    %c0_18 = arith.constant 0 : index
    %c12 = arith.constant 12 : index
    %18 = vector.load %arg6[%c0_18, %c12] : memref<256x36xf32, #tpu.memory_space<vmem>>, vector<256x4xf32>
    tpu.vector_store %arg6[%c0_18, %c12], %17 {strides = array<i32>} : memref<256x36xf32, #tpu.memory_space<vmem>>, vector<256x4xf32>,
    %c0_19 = arith.constant 0 : index
    %c1_20 = arith.constant 1 : index
    %c1_21 = arith.constant 1 : index
    %c0_22 = arith.constant 0 : index
    %19 = vector.load %arg2[%c0_19, %c1_20, %c1_21, %c0_22] : memref<1x18x18x4xf32, #tpu.memory_space<vmem>>, vector<1x16x16x4xf32>
    %20 = vector.shape_cast %19 : vector<1x16x16x4xf32> to vector<16x16x4xf32>
    %21 = vector.shape_cast %20 : vector<16x16x4xf32> to vector<256x4xf32>
    %c0_23 = arith.constant 0 : index
    %c16 = arith.constant 16 : index
    %22 = vector.load %arg6[%c0_23, %c16] : memref<256x36xf32, #tpu.memory_space<vmem>>, vector<256x4xf32>
    tpu.vector_store %arg6[%c0_23, %c16], %21 {strides = array<i32>} : memref<256x36xf32, #tpu.memory_space<vmem>>, vector<256x4xf32>,
    %c0_24 = arith.constant 0 : index
    %c1_25 = arith.constant 1 : index
    %c2_26 = arith.constant 2 : index
    %c0_27 = arith.constant 0 : index
    %23 = vector.load %arg2[%c0_24, %c1_25, %c2_26, %c0_27] : memref<1x18x18x4xf32, #tpu.memory_space<vmem>>, vector<1x16x16x4xf32>
    %24 = vector.shape_cast %23 : vector<1x16x16x4xf32> to vector<16x16x4xf32>
    %25 = vector.shape_cast %24 : vector<16x16x4xf32> to vector<256x4xf32>
    %c0_28 = arith.constant 0 : index
    %c20 = arith.constant 20 : index
    %26 = vector.load %arg6[%c0_28, %c20] : memref<256x36xf32, #tpu.memory_space<vmem>>, vector<256x4xf32>
    tpu.vector_store %arg6[%c0_28, %c20], %25 {strides = array<i32>} : memref<256x36xf32, #tpu.memory_space<vmem>>, vector<256x4xf32>,
    %c0_29 = arith.constant 0 : index
    %c2_30 = arith.constant 2 : index
    %c0_31 = arith.constant 0 : index
    %c0_32 = arith.constant 0 : index
    %27 = vector.load %arg2[%c0_29, %c2_30, %c0_31, %c0_32] : memref<1x18x18x4xf32, #tpu.memory_space<vmem>>, vector<1x16x16x4xf32>
    %28 = vector.shape_cast %27 : vector<1x16x16x4xf32> to vector<16x16x4xf32>
    %29 = vector.shape_cast %28 : vector<16x16x4xf32> to vector<256x4xf32>
    %c0_33 = arith.constant 0 : index
    %c24 = arith.constant 24 : index
    %30 = vector.load %arg6[%c0_33, %c24] : memref<256x36xf32, #tpu.memory_space<vmem>>, vector<256x4xf32>
    tpu.vector_store %arg6[%c0_33, %c24], %29 {strides = array<i32>} : memref<256x36xf32, #tpu.memory_space<vmem>>, vector<256x4xf32>,
    %c0_34 = arith.constant 0 : index
    %c2_35 = arith.constant 2 : index
    %c1_36 = arith.constant 1 : index
    %c0_37 = arith.constant 0 : index
    %31 = vector.load %arg2[%c0_34, %c2_35, %c1_36, %c0_37] : memref<1x18x18x4xf32, #tpu.memory_space<vmem>>, vector<1x16x16x4xf32>
    %32 = vector.shape_cast %31 : vector<1x16x16x4xf32> to vector<16x16x4xf32>
    %33 = vector.shape_cast %32 : vector<16x16x4xf32> to vector<256x4xf32>
    %c0_38 = arith.constant 0 : index
    %c28 = arith.constant 28 : index
    %34 = vector.load %arg6[%c0_38, %c28] : memref<256x36xf32, #tpu.memory_space<vmem>>, vector<256x4xf32>
    tpu.vector_store %arg6[%c0_38, %c28], %33 {strides = array<i32>} : memref<256x36xf32, #tpu.memory_space<vmem>>, vector<256x4xf32>,
    %c0_39 = arith.constant 0 : index
    %c2_40 = arith.constant 2 : index
    %c2_41 = arith.constant 2 : index
    %c0_42 = arith.constant 0 : index
    %35 = vector.load %arg2[%c0_39, %c2_40, %c2_41, %c0_42] : memref<1x18x18x4xf32, #tpu.memory_space<vmem>>, vector<1x16x16x4xf32>
    %36 = vector.shape_cast %35 : vector<1x16x16x4xf32> to vector<16x16x4xf32>
    %37 = vector.shape_cast %36 : vector<16x16x4xf32> to vector<256x4xf32>
    %c0_43 = arith.constant 0 : index
    %c32 = arith.constant 32 : index
    %38 = vector.load %arg6[%c0_43, %c32] : memref<256x36xf32, #tpu.memory_space<vmem>>, vector<256x4xf32>
    tpu.vector_store %arg6[%c0_43, %c32], %37 {strides = array<i32>} : memref<256x36xf32, #tpu.memory_space<vmem>>, vector<256x4xf32>,
    %c0_44 = arith.constant 0 : index
    %c0_45 = arith.constant 0 : index
    %39 = vector.load %arg6[%c0_44, %c0_45] : memref<256x36xf32, #tpu.memory_space<vmem>>, vector<256x36xf32>
    %c0_46 = arith.constant 0 : index
    %c0_47 = arith.constant 0 : index
    %40 = vector.load %arg3[%c0_46, %c0_47] : memref<36x128xf32, #tpu.memory_space<vmem>>, vector<36x128xf32>
    %cst = arith.constant dense<0.000000e+00> : vector<256x128xf32>
    %41 = tpu.matmul %39, %40, %cst {dimension_numbers = #tpu.dot_dimension_numbers<[1], [0], [0], [1], [0, 0, 1, 1], [], []>} : vector<256x36xf32>, vector<36x128xf32>, vector<256x128xf32> -> vector<256x128xf32>
    %c0_48 = arith.constant 0 : index
    %c0_49 = arith.constant 0 : index
    %c0_50 = arith.constant 0 : index
    %42 = vector.load %arg4[%c0_48, %c0_49, %c0_50] : memref<1x1x128xf32, #tpu.memory_space<vmem>>, vector<1x1x128xf32>
    %43 = vector.shape_cast %42 : vector<1x1x128xf32> to vector<1x128xf32>
    %cst_51 = arith.constant dense<0.000000e+00> : vector<128xf32>
    %44 = vector.multi_reduction <add>, %41, %cst_51 [0] : vector<256x128xf32> to vector<128xf32>
    %45 = vector.shape_cast %44 : vector<128xf32> to vector<1x128xf32>
    %46 = arith.addf %43, %45 : vector<1x128xf32>
    %c0_52 = arith.constant 0 : index
    %c0_53 = arith.constant 0 : index
    %c0_54 = arith.constant 0 : index
    %47 = vector.load %arg4[%c0_52, %c0_53, %c0_54] : memref<1x1x128xf32, #tpu.memory_space<vmem>>, vector<1x1x128xf32>
    %48 = vector.shape_cast %47 : vector<1x1x128xf32> to vector<1x128xf32>
    %49 = vector.shape_cast %46 : vector<1x128xf32> to vector<1x1x128xf32>
    tpu.vector_store %arg4[%c0_52, %c0_53, %c0_54], %49 {strides = array<i32>} : memref<1x1x128xf32, #tpu.memory_space<vmem>>, vector<1x1x128xf32>,
    %c0_55 = arith.constant 0 : index
    %c0_56 = arith.constant 0 : index
    %c0_57 = arith.constant 0 : index
    %50 = vector.load %arg5[%c0_55, %c0_56, %c0_57] : memref<1x1x128xf32, #tpu.memory_space<vmem>>, vector<1x1x128xf32>
    %51 = vector.shape_cast %50 : vector<1x1x128xf32> to vector<1x128xf32>
    %52 = arith.mulf %41, %41 : vector<256x128xf32>
    %cst_58 = arith.constant dense<0.000000e+00> : vector<128xf32>
    %53 = vector.multi_reduction <add>, %52, %cst_58 [0] : vector<256x128xf32> to vector<128xf32>
    %54 = vector.shape_cast %53 : vector<128xf32> to vector<1x128xf32>
    %55 = arith.addf %51, %54 : vector<1x128xf32>
    %c0_59 = arith.constant 0 : index
    %c0_60 = arith.constant 0 : index
    %c0_61 = arith.constant 0 : index
    %56 = vector.load %arg5[%c0_59, %c0_60, %c0_61] : memref<1x1x128xf32, #tpu.memory_space<vmem>>, vector<1x1x128xf32>
    %57 = vector.shape_cast %56 : vector<1x1x128xf32> to vector<1x128xf32>
    %58 = vector.shape_cast %55 : vector<1x128xf32> to vector<1x1x128xf32>
    tpu.vector_store %arg5[%c0_59, %c0_60, %c0_61], %58 {strides = array<i32>} : memref<1x1x128xf32, #tpu.memory_space<vmem>>, vector<1x1x128xf32>,
    return
  }
  func.func @transform_0(%arg0: i32, %arg1: i32) -> (i32, i32, i32, i32) {
    %c1_i32 = arith.constant 1 : i32
    %0 = arith.muli %arg0, %c1_i32 : i32
    %1 = arith.addi %0, %arg1 : i32
    %c0_i32 = arith.constant 0 : i32
    %c0_i32_0 = arith.constant 0 : i32
    %c0_i32_1 = arith.constant 0 : i32
    %c0_i32_2 = arith.constant 0 : i32
    return %1, %c0_i32, %c0_i32_0, %c0_i32_1 : i32, i32, i32, i32
  }
  func.func @transform_1(%arg0: i32, %arg1: i32) -> (i32, i32) {
    %c0_i32 = arith.constant 0 : i32
    %c0_i32_0 = arith.constant 0 : i32
    %c0_i32_1 = arith.constant 0 : i32
    return %c0_i32, %c0_i32_0 : i32, i32
  }
  func.func @transform_2(%arg0: i32, %arg1: i32) -> (i32, i32, i32) {
    %c0_i32 = arith.constant 0 : i32
    %c0_i32_0 = arith.constant 0 : i32
    %c0_i32_1 = arith.constant 0 : i32
    return %arg0, %c0_i32, %c0_i32_0 : i32, i32, i32
  }
  func.func @transform_3(%arg0: i32, %arg1: i32) -> (i32, i32, i32) {
    %c0_i32 = arith.constant 0 : i32
    %c0_i32_0 = arith.constant 0 : i32
    %c0_i32_1 = arith.constant 0 : i32
    return %arg0, %c0_i32, %c0_i32_0 : i32, i32, i32
  }
}

</mosaic_0001>

<bundles_post_ra>
// kernel: tpu_custom_call.1
= control target key start
LH: loop header
LB: loop body
LE: loop exit
PB: predicated region body
PF: predicated region fallthrough
CT: control target
= control target key end

     0   :  { %9 = vsyncpa [#allocation4], 0  ;;  %s4126_s0 = inlined_call_operand.vmem [shape: f32[2,18,18,4], index: 0, kind: input, shape index: {}]   ;;  %s4127_s1 = inlined_call_operand.vmem [shape: f32[36,128], index: 1, kind: input, shape index: {}]   ;;  %s4128_s2 = inlined_call_operand.hbm [shape: f32[2,1,128], index: 2, kind: output, shape index: {0}]   ;;  %s4129_s3 = inlined_call_operand.hbm [shape: f32[2,1,128], index: 3, kind: output, shape index: {1}]  }
   0x1   :  { %11 = vsyncpa [#allocation4 + $0x1], 0 }
   0x2   :  { %12 = vsyncpa [#allocation6], 0 }
   0x3   :  { %14 = vsyncpa [#allocation6 + $0x1], 0  ;;  %s2967_s12 = smov 0   ;;  %s2969_s13 = smov 0  }
   0x4   :  { %s2971_s14 = smov 0   ;;  %s2973_s15 = smov 0  }
   0x5   :  { %s2975_s16 = smov 0   ;;  %s2977_s17 = smov 0  }
   0x6 LB: > { %s2410_s18 = sadd.s32 4294967295, %s2934_s17   ;;  %s2411_s19 = sadd.s32 4294967294, %s2934_s17   ;;  %s2934_s17 = sphi %s2977_s17, %s20_s17   ;;  %s2930_s16 = sphi %s2975_s16, %s4136_s16   ;;  %s2926_s15 = sphi %s2973_s15, %s4135_s15   ;;  %s2922_s14 = sphi %s2971_s14, %s4134_s14   ;;  %s2918_s13 = sphi %s2969_s13, %s4133_s13   ;;  %s2914_s12 = sphi %s2967_s12, %s4132_s12  }
   0x7   : > { %s32_s20 = sadd.s32 1, %s2930_s16  ;;  %s88_s21 = sadd.s32 1, %s2922_s14 }
   0x8   : > { %p34_p0 = scmp.ge.s32.totalorder %s32_s20, 2  ;;  %p98_p1 = scmp.ne.s32.totalorder %s2922_s14, %s2918_s13 }
   0x9   : > { %p99_p2 = scmp.eq.s32.totalorder %s2410_s18, 1  ;;  %p104_p3 = scmp.ne.s32.totalorder %s2918_s13, %s2914_s12 }
   0xa   : > { %s4138_s20 = smov (%p34_p0, %s32_s20), 0  ;;  %p105_p5 = scmp.eq.s32.totalorder %s2411_s19, 1 }
   0xb   : > { %p3007_p4 = por %p99_p2, %p98_p1  ;;  %s85_s23 = ssub.s32 %s2930_s16, %s4138_s20 }
   0xc   : > { %p2414_p6 = scmp.ge.s32.totalorder %s2934_s17, 1  ;;  %p86_p7 = scmp.eq.s32.totalorder %s85_s23, 0 }
   0xd   : > { %p3014_p8 = por %p105_p5, %p104_p3  ;;  %p162_p9 = scmp.lt.s32.totalorder %s2934_s17, 3 }
   0xe   : > { %s3020_s25 = scalar_select %p86_p7, %s2922_s14, %s88_s21  }
   0xf   : > { %p163_p10 = pnand %p2414_p6, %p162_p9 }
  0x10   : > { %p191_p11 = scmp.lt.s32.totalorder (!%p163_p10), %s2926_s15, 1  ;;  %s2936_s4 = smov (!%p163_p10), 4   ;;  %vm235_vm0 = vcmask (!%p163_p10), 31744   ;;  %vm428_vm1 = vcmask (!%p163_p10), 64544   ;;  %vm1948_vm2 = vcmask (!%p163_p10), 1043456   ;;  %vm621_vm3 = vcmask (!%p163_p10), 97344  }
  0x11   : > { %166 = sbr.rel (%p163_p10) target bundleno = 930 (0x3a2), region = 28  ;;  %s2937_s5 = smov (!%p163_p10), 8   ;;  %vm815_vm4 = vcmask (!%p163_p10), 130144   ;;  %vm1008_vm5 = vcmask (!%p163_p10), 162944   ;;  %vm1201_vm6 = vcmask (!%p163_p10), 195744   ;;  %vm1395_vm7 = vcmask (!%p163_p10), 228544  }
  0x12   : > { %s2938_s6 = smov (!%p163_p10), 12   ;;  %s2939_s7 = smov (!%p163_p10), 16   ;;  %vm1588_vm8 = vcmask (!%p163_p10), 261344   ;;  %vm1781_vm9 = vcmask (!%p163_p10), 294144   ;;  %vm1851_vm10 = vcmask (!%p163_p10), 293888  }
  0x13   : > { %s2940_s8 = smov (!%p163_p10), 20   ;;  %s2941_s19 = smov (!%p163_p10), 24  }
  0x14   : > { %s2942_s28 = smov (!%p163_p10), 28   ;;  %s2943_s29 = smov (!%p163_p10), 32  }
  0x18   : > { %s192_s26 = scalar_select %p191_p11, %s2926_s15, 1 }
  0x1a   : > { %s2754_s27 = smul.u32 432, %s192_s26 }
  0x1c   : > { %s3027_s30 = scalar_lea.vmem %s4126_s0, %s2754_s27 }
  0x1d   : > { %v268_v0 = vld [vmem:[%s3027_s30 + $0x1] sm:$0xff]  ;;  %v3031_v1 = vld [vmem:[%s3027_s30 + $0x19] sm:$0xff]  ;;  %v269_v2 = vld [vmem:[%s3027_s30 + $0x9] sm:$0xff] }
  0x1e   : > { %332 = vrot.lane.b32.xlu0 %v268_v0, %s2936_s4  ;;  %336 = vrot.lane.b32.xlu1 %v3031_v1, %s2936_s4  ;;  %v3038_v3 = vld [vmem:[%s3027_s30 + $0x21] sm:$0xff]  ;;  %v3044_v4 = vld [vmem:[%s3027_s30 + $0x31] sm:$0xff] }
  0x1f   : > { %v3047_v5 = vld [vmem:[%s3027_s30 + $0x39] sm:$0xff]  ;;  %v3054_v6 = vld [vmem:[%s3027_s30 + $0x49] sm:$0xff]  ;;  %v3057_v7 = vld [vmem:[%s3027_s30 + $0x51] sm:$0xff] }
  0x20   : > { %v3064_v8 = vld [vmem:[%s3027_s30 + $0x61] sm:$0xff]  ;;  %v3067_v9 = vld [vmem:[%s3027_s30 + $0x69] sm:$0xff]  ;;  %v3074_v10 = vld [vmem:[%s3027_s30 + $0x79] sm:$0xff] }
  0x21   : > { %v3077_v11 = vld [vmem:[%s3027_s30 + $0x81] sm:$0xff]  ;;  %v3085_v13 = vld [vmem:[%s3027_s30 + $0x18] sm:$0xff]  ;;  %v3102_v18 = vld [vmem:[%s3027_s30 + $0xa9] sm:$0xff] }
  0x22   : > { %334 = vrot.lane.b32.xlu0 %v269_v2, %s2936_s4  ;;  %338 = vrot.lane.b32.xlu1 %v3038_v3, %s2936_s4  ;;  %v203_v12 = vld [vmem:[%s3027_s30] sm:$0xff]  ;;  %v3088_v14 = vld [vmem:[%s3027_s30 + $0x91] sm:$0xff]  ;;  %238 = vst.msk [vmem:[#allocation2 + $0x10] sm:$0xff] %vm235_vm0, %v3085_v13 }
  0x23   : > { %v3091_v15 = vld [vmem:[%s3027_s30 + $0x99] sm:$0xff]  ;;  %236 = vst.msk [vmem:[#allocation2] sm:$0xff] %vm235_vm0, %v203_v12  ;;  %v204_v16 = vld [vmem:[%s3027_s30 + $0x8] sm:$0xff]  ;;  %v3107_v19 = vld [vmem:[%s3027_s30 + $0x30] sm:$0xff] }
  0x24   : > { %237 = vst.msk [vmem:[#allocation2 + $0x8] sm:$0xff] %vm235_vm0, %v204_v16  ;;  %v3099_v17 = vld [vmem:[%s3027_s30 + $0x20] sm:$0xff]  ;;  %v3110_v20 = vld [vmem:[%s3027_s30 + $0x38] sm:$0xff]  ;;  %240 = vst.msk [vmem:[#allocation2 + $0x20] sm:$0xff] %vm235_vm0, %v3107_v19 }
  0x25   : > { %239 = vst.msk [vmem:[#allocation2 + $0x18] sm:$0xff] %vm235_vm0, %v3099_v17  ;;  %v3117_v21 = vld [vmem:[%s3027_s30 + $0xb1] sm:$0xff]  ;;  %241 = vst.msk [vmem:[#allocation2 + $0x28] sm:$0xff] %vm235_vm0, %v3110_v20  ;;  %v3124_v22 = vld [vmem:[%s3027_s30 + $0x48] sm:$0xff] }
  0x26   : > { %340 = vrot.lane.b32.xlu0 %v3044_v4, %s2936_s4  ;;  %342 = vrot.lane.b32.xlu1 %v3047_v5, %s2936_s4  ;;  %242 = vst.msk [vmem:[#allocation2 + $0x30] sm:$0xff] %vm235_vm0, %v3124_v22  ;;  %v3129_v23 = vld [vmem:[%s3027_s30 + $0x50] sm:$0xff]  ;;  %v3132_v24 = vld [vmem:[%s3027_s30 + $0x60] sm:$0xff] }
  0x27   : > { %v3135_v25 = vld [vmem:[%s3027_s30 + $0x68] sm:$0xff]  ;;  %243 = vst.msk [vmem:[#allocation2 + $0x38] sm:$0xff] %vm235_vm0, %v3129_v23  ;;  %244 = vst.msk [vmem:[#allocation2 + $0x40] sm:$0xff] %vm235_vm0, %v3132_v24  ;;  %v3144_v26 = vld [vmem:[%s3027_s30 + $0x78] sm:$0xff] }
  0x28   : > { %245 = vst.msk [vmem:[#allocation2 + $0x48] sm:$0xff] %vm235_vm0, %v3135_v25  ;;  %v3147_v27 = vld [vmem:[%s3027_s30 + $0x80] sm:$0xff]  ;;  %v3150_v28 = vld [vmem:[%s3027_s30 + $0x90] sm:$0xff]  ;;  %246 = vst.msk [vmem:[#allocation2 + $0x50] sm:$0xff] %vm235_vm0, %v3144_v26 }
  0x29   : > { %v284_v29 = vld [vmem:[%s3027_s30 + $0xc1] sm:$0xff]  ;;  %v285_v30 = vld [vmem:[%s3027_s30 + $0xc9] sm:$0xff]  ;;  %247 = vst.msk [vmem:[#allocation2 + $0x58] sm:$0xff] %vm235_vm0, %v3147_v27  ;;  %248 = vst.msk [vmem:[#allocation2 + $0x60] sm:$0xff] %vm235_vm0, %v3150_v28 }
  0x2a   : > { %344 = vrot.lane.b32.xlu0 %v3054_v6, %s2936_s4  ;;  %346 = vrot.lane.b32.xlu1 %v3057_v7, %s2936_s4  ;;  %v3161_v31 = vld [vmem:[%s3027_s30 + $0x98] sm:$0xff]  ;;  %v3164_v32 = vld [vmem:[%s3027_s30 + $0xa8] sm:$0xff] }
  0x2b   : > { %v3167_v33 = vld [vmem:[%s3027_s30 + $0xb0] sm:$0xff]  ;;  %249 = vst.msk [vmem:[#allocation2 + $0x68] sm:$0xff] %vm235_vm0, %v3161_v31  ;;  %250 = vst.msk [vmem:[#allocation2 + $0x70] sm:$0xff] %vm235_vm0, %v3164_v32  ;;  %v3180_v34 = vld [vmem:[%s3027_s30 + $0xc0] sm:$0xff] }
  0x2c   : > { %251 = vst.msk [vmem:[#allocation2 + $0x78] sm:$0xff] %vm235_vm0, %v3167_v33  ;;  %v3183_v35 = vld [vmem:[%s3027_s30 + $0xc8] sm:$0xff]  ;;  %252 = vst.msk [vmem:[#allocation2 + $0x80] sm:$0xff] %vm235_vm0, %v3180_v34  ;;  %v3190_v36 = vld [vmem:[%s3027_s30 + $0xd8] sm:$0xff] }
  0x2d   : > { %253 = vst.msk [vmem:[#allocation2 + $0x88] sm:$0xff] %vm235_vm0, %v3183_v35  ;;  %v3193_v37 = vld [vmem:[%s3027_s30 + $0xe0] sm:$0xff]  ;;  %v3196_v38 = vld [vmem:[%s3027_s30 + $0xf0] sm:$0xff]  ;;  %254 = vst.msk [vmem:[#allocation2 + $0x90] sm:$0xff] %vm235_vm0, %v3190_v36 }
  0x2e   : > { %348 = vrot.lane.b32.xlu0 %v3064_v8, %s2936_s4  ;;  %350 = vrot.lane.b32.xlu1 %v3067_v9, %s2936_s4  ;;  %255 = vst.msk [vmem:[#allocation2 + $0x98] sm:$0xff] %vm235_vm0, %v3193_v37  ;;  %256 = vst.msk [vmem:[#allocation2 + $0xa0] sm:$0xff] %vm235_vm0, %v3196_v38  ;;  %v3205_v39 = vld [vmem:[%s3027_s30 + $0xf8] sm:$0xff]  ;;  %v3208_v40 = vld [vmem:[%s3027_s30 + $0x108] sm:$0xff] }
  0x2f   : > { %v3211_v41 = vld [vmem:[%s3027_s30 + $0x110] sm:$0xff]  ;;  %257 = vst.msk [vmem:[#allocation2 + $0xa8] sm:$0xff] %vm235_vm0, %v3205_v39  ;;  %258 = vst.msk [vmem:[#allocation2 + $0xb0] sm:$0xff] %vm235_vm0, %v3208_v40  ;;  %v286_v42 = vld [vmem:[%s3027_s30 + $0xd9] sm:$0xff] }
  0x30   : > { %259 = vst.msk [vmem:[#allocation2 + $0xb8] sm:$0xff] %vm235_vm0, %v3211_v41  ;;  %v287_v43 = vld [vmem:[%s3027_s30 + $0xe1] sm:$0xff]  ;;  %v288_v46 = vld [vmem:[%s3027_s30 + $0xf1] sm:$0xff]  ;;  %v289_v47 = vld [vmem:[%s3027_s30 + $0xf9] sm:$0xff] }
  0x31   : > { %v3224_v44 = vld [vmem:[%s3027_s30 + $0x120] sm:$0xff]  ;;  %v3229_v45 = vld [vmem:[%s3027_s30 + $0x128] sm:$0xff]  ;;  %v229_v48 = vld [vmem:[%s3027_s30 + $0x138] sm:$0xff] }
  0x32   : > { %352 = vrot.lane.b32.xlu0 %v3074_v10, %s2936_s4  ;;  %354 = vrot.lane.b32.xlu1 %v3077_v11, %s2936_s4  ;;  %260 = vst.msk [vmem:[#allocation2 + $0xc0] sm:$0xff] %vm235_vm0, %v3224_v44  ;;  %261 = vst.msk [vmem:[#allocation2 + $0xc8] sm:$0xff] %vm235_vm0, %v3229_v45  ;;  %v230_v49 = vld [vmem:[%s3027_s30 + $0x140] sm:$0xff]  ;;  %v290_v50 = vld [vmem:[%s3027_s30 + $0x109] sm:$0xff] }
  0x33   : > { %262 = vst.msk [vmem:[#allocation2 + $0xd0] sm:$0xff] %vm235_vm0, %v229_v48  ;;  %263 = vst.msk [vmem:[#allocation2 + $0xd8] sm:$0xff] %vm235_vm0, %v230_v49  ;;  %v291_v51 = vld [vmem:[%s3027_s30 + $0x111] sm:$0xff]  ;;  %v292_v54 = vld [vmem:[%s3027_s30 + $0x121] sm:$0xff] }
  0x34   : > { %v231_v52 = vld [vmem:[%s3027_s30 + $0x150] sm:$0xff]  ;;  %v232_v53 = vld [vmem:[%s3027_s30 + $0x158] sm:$0xff]  ;;  %v233_v56 = vld [vmem:[%s3027_s30 + $0x168] sm:$0xff] }
  0x35   : > { %264 = vst.msk [vmem:[#allocation2 + $0xe0] sm:$0xff] %vm235_vm0, %v231_v52  ;;  %265 = vst.msk [vmem:[#allocation2 + $0xe8] sm:$0xff] %vm235_vm0, %v232_v53  ;;  %v293_v55 = vld [vmem:[%s3027_s30 + $0x129] sm:$0xff]  ;;  %v294_v58 = vld [vmem:[%s3027_s30 + $0x139] sm:$0xff] }
  0x36   : > { %356 = vrot.lane.b32.xlu0 %v3088_v14, %s2936_s4  ;;  %358 = vrot.lane.b32.xlu1 %v3091_v15, %s2936_s4  ;;  %266 = vst.msk [vmem:[#allocation2 + $0xf0] sm:$0xff] %vm235_vm0, %v233_v56  ;;  %v234_v57 = vld [vmem:[%s3027_s30 + $0x170] sm:$0xff]  ;;  %v295_v59 = vld [vmem:[%s3027_s30 + $0x141] sm:$0xff] }
  0x37   : > { %267 = vst.msk [vmem:[#allocation2 + $0xf8] sm:$0xff] %vm235_vm0, %v234_v57  ;;  %v296_v60 = vld [vmem:[%s3027_s30 + $0x151] sm:$0xff]  ;;  %v297_v61 = vld [vmem:[%s3027_s30 + $0x159] sm:$0xff]  ;;  %v298_v62 = vld [vmem:[%s3027_s30 + $0x169] sm:$0xff] }
  0x38   : > { %v299_v63 = vld [vmem:[%s3027_s30 + $0x171] sm:$0xff]  ;;  %v461_v0 = vld [vmem:[%s3027_s30 + $0x2] sm:$0xff]  ;;  %v3276_v12 = vld [vmem:[%s3027_s30 + $0x1a] sm:$0xff] }
  0x39   : > { %v462_v2 = vld [vmem:[%s3027_s30 + $0xa] sm:$0xff]  ;;  %v3279_v16 = vld [vmem:[%s3027_s30 + $0x22] sm:$0xff]  ;;  %v3316_v48 = vld [vmem:[%s3027_s30 + $0x7a] sm:$0xff] }
  0x3a   : > { %360 = vrot.lane.b32.xlu0 %v3102_v18, %s2936_s4  ;;  %362 = vrot.lane.b32.xlu1 %v3117_v21, %s2936_s4  ;;  %v3319_v49 = vld [vmem:[%s3027_s30 + $0x82] sm:$0xff]  ;;  %v3336_v52 = vld [vmem:[%s3027_s30 + $0xaa] sm:$0xff] }
  0x3b   : > { %v3339_v53 = vld [vmem:[%s3027_s30 + $0xb2] sm:$0xff]  ;;  %v479_v56 = vld [vmem:[%s3027_s30 + $0xda] sm:$0xff]  ;;  %v480_v57 = vld [vmem:[%s3027_s30 + $0xe2] sm:$0xff] }
  0x3e   : > { %364 = vrot.lane.b32.xlu0 %v284_v29, %s2936_s4  ;;  %366 = vrot.lane.b32.xlu1 %v285_v30, %s2936_s4  ;;  %v3286_v29 = vld [vmem:[%s3027_s30 + $0x32] sm:$0xff]  ;;  %v3289_v30 = vld [vmem:[%s3027_s30 + $0x3a] sm:$0xff] }
  0x42   : > { %368 = vrot.lane.b32.xlu0 %v286_v42, %s2936_s4  ;;  %370 = vrot.lane.b32.xlu1 %v287_v43, %s2936_s4  ;;  %v3296_v42 = vld [vmem:[%s3027_s30 + $0x4a] sm:$0xff]  ;;  %v3299_v43 = vld [vmem:[%s3027_s30 + $0x52] sm:$0xff] }
  0x46   : > { %372 = vrot.lane.b32.xlu0 %v288_v46, %s2936_s4  ;;  %374 = vrot.lane.b32.xlu1 %v289_v47, %s2936_s4  ;;  %v3306_v46 = vld [vmem:[%s3027_s30 + $0x62] sm:$0xff]  ;;  %v3309_v47 = vld [vmem:[%s3027_s30 + $0x6a] sm:$0xff] }
  0x4a   : > { %376 = vrot.lane.b32.xlu0 %v290_v50, %s2936_s4  ;;  %378 = vrot.lane.b32.xlu1 %v291_v51, %s2936_s4  ;;  %v3326_v50 = vld [vmem:[%s3027_s30 + $0x92] sm:$0xff]  ;;  %v3329_v51 = vld [vmem:[%s3027_s30 + $0x9a] sm:$0xff] }
  0x4e   : > { %380 = vrot.lane.b32.xlu0 %v292_v54, %s2936_s4  ;;  %382 = vrot.lane.b32.xlu1 %v293_v55, %s2936_s4  ;;  %v3346_v54 = vld [vmem:[%s3027_s30 + $0xc2] sm:$0xff]  ;;  %v3349_v55 = vld [vmem:[%s3027_s30 + $0xca] sm:$0xff] }
  0x52   : > { %384 = vrot.lane.b32.xlu0 %v294_v58, %s2936_s4  ;;  %386 = vrot.lane.b32.xlu1 %v295_v59, %s2936_s4  ;;  %v481_v58 = vld [vmem:[%s3027_s30 + $0xf2] sm:$0xff]  ;;  %v482_v59 = vld [vmem:[%s3027_s30 + $0xfa] sm:$0xff] }
  0x56   : > { %388 = vrot.lane.b32.xlu0 %v296_v60, %s2936_s4  ;;  %390 = vrot.lane.b32.xlu1 %v297_v61, %s2936_s4  ;;  %v483_v60 = vld [vmem:[%s3027_s30 + $0x10a] sm:$0xff]  ;;  %v484_v61 = vld [vmem:[%s3027_s30 + $0x112] sm:$0xff] }
  0x5a   : > { %392 = vrot.lane.b32.xlu0 %v298_v62, %s2936_s4  ;;  %394 = vrot.lane.b32.xlu1 %v299_v63, %s2936_s4  ;;  %v485_v62 = vld [vmem:[%s3027_s30 + $0x122] sm:$0xff]  ;;  %v486_v63 = vld [vmem:[%s3027_s30 + $0x12a] sm:$0xff] }
  0x5e   : > { %525 = vrot.lane.b32.xlu0 %v461_v0, %s2937_s5  ;;  %527 = vrot.lane.b32.xlu1 %v462_v2, %s2937_s5  ;;  %v487_v0 = vld [vmem:[%s3027_s30 + $0x13a] sm:$0xff]  ;;  %v488_v2 = vld [vmem:[%s3027_s30 + $0x142] sm:$0xff] }
  0x62   : > { %529 = vrot.lane.b32.xlu0 %v3276_v12, %s2937_s5  ;;  %531 = vrot.lane.b32.xlu1 %v3279_v16, %s2937_s5 }
  0x66   : > { %533 = vrot.lane.b32.xlu0 %v3286_v29, %s2937_s5  ;;  %535 = vrot.lane.b32.xlu1 %v3289_v30, %s2937_s5 }
  0x6a   : > { %537 = vrot.lane.b32.xlu0 %v3296_v42, %s2937_s5  ;;  %539 = vrot.lane.b32.xlu1 %v3299_v43, %s2937_s5 }
  0x6e   : > { %541 = vrot.lane.b32.xlu0 %v3306_v46, %s2937_s5  ;;  %543 = vrot.lane.b32.xlu1 %v3309_v47, %s2937_s5 }
  0x72   : > { %545 = vrot.lane.b32.xlu0 %v3316_v48, %s2937_s5  ;;  %547 = vrot.lane.b32.xlu1 %v3319_v49, %s2937_s5 }
  0x76   : > { %549 = vrot.lane.b32.xlu0 %v3326_v50, %s2937_s5  ;;  %551 = vrot.lane.b32.xlu1 %v3329_v51, %s2937_s5 }
  0x7a   : > { %553 = vrot.lane.b32.xlu0 %v3336_v52, %s2937_s5  ;;  %555 = vrot.lane.b32.xlu1 %v3339_v53, %s2937_s5 }
  0x7e   : > { %557 = vrot.lane.b32.xlu0 %v3346_v54, %s2937_s5  ;;  %559 = vrot.lane.b32.xlu1 %v3349_v55, %s2937_s5 }
  0x82   : > { %561 = vrot.lane.b32.xlu0 %v479_v56, %s2937_s5  ;;  %563 = vrot.lane.b32.xlu1 %v480_v57, %s2937_s5 }
  0x86   : > { %565 = vrot.lane.b32.xlu0 %v481_v58, %s2937_s5  ;;  %567 = vrot.lane.b32.xlu1 %v482_v59, %s2937_s5  ;;  %v489_v58 = vld [vmem:[%s3027_s30 + $0x152] sm:$0xff]  ;;  %v490_v59 = vld [vmem:[%s3027_s30 + $0x15a] sm:$0xff] }
  0x8a   : > { %569 = vrot.lane.b32.xlu0 %v483_v60, %s2937_s5  ;;  %571 = vrot.lane.b32.xlu1 %v484_v61, %s2937_s5 }
  0x8e   : > { %573 = vrot.lane.b32.xlu0 %v485_v62, %s2937_s5  ;;  %575 = vrot.lane.b32.xlu1 %v486_v63, %s2937_s5  ;;  %v491_v62 = vld [vmem:[%s3027_s30 + $0x16a] sm:$0xff]  ;;  %v492_v63 = vld [vmem:[%s3027_s30 + $0x172] sm:$0xff] }
  0x90   : > { %v333_v56 = vpop.permute.xlu0 %332  ;;  %v337_v57 = vpop.permute.xlu1 %336 }
  0x91   : > { %429 = vst.msk [vmem:[#allocation2] sm:$0xff] %vm428_vm1, %v333_v56  ;;  %431 = vst.msk [vmem:[#allocation2 + $0x10] sm:$0xff] %vm428_vm1, %v337_v57 }
  0x92   : > { %577 = vrot.lane.b32.xlu0 %v487_v0, %s2937_s5  ;;  %579 = vrot.lane.b32.xlu1 %v488_v2, %s2937_s5 }
  0x94   : > { %v335_v60 = vpop.permute.xlu0 %334  ;;  %v339_v61 = vpop.permute.xlu1 %338 }
  0x95   : > { %430 = vst.msk [vmem:[#allocation2 + $0x8] sm:$0xff] %vm428_vm1, %v335_v60  ;;  %432 = vst.msk [vmem:[#allocation2 + $0x18] sm:$0xff] %vm428_vm1, %v339_v61 }
  0x96   : > { %581 = vrot.lane.b32.xlu0 %v489_v58, %s2937_s5  ;;  %583 = vrot.lane.b32.xlu1 %v490_v59, %s2937_s5 }
  0x98   : > { %v341_v56 = vpop.permute.xlu0 %340  ;;  %v343_v57 = vpop.permute.xlu1 %342 }
  0x99   : > { %433 = vst.msk [vmem:[#allocation2 + $0x20] sm:$0xff] %vm428_vm1, %v341_v56  ;;  %434 = vst.msk [vmem:[#allocation2 + $0x28] sm:$0xff] %vm428_vm1, %v343_v57 }
  0x9a   : > { %585 = vrot.lane.b32.xlu0 %v491_v62, %s2937_s5  ;;  %587 = vrot.lane.b32.xlu1 %v492_v63, %s2937_s5 }
  0x9c   : > { %v345_v0 = vpop.permute.xlu0 %344  ;;  %v347_v2 = vpop.permute.xlu1 %346 }
  0x9d   : > { %435 = vst.msk [vmem:[#allocation2 + $0x30] sm:$0xff] %vm428_vm1, %v345_v0  ;;  %436 = vst.msk [vmem:[#allocation2 + $0x38] sm:$0xff] %vm428_vm1, %v347_v2 }
  0x9e   : > { %719 = vrot.lane.b32.xlu0 %v3085_v13, %s2938_s6  ;;  %721 = vrot.lane.b32.xlu1 %v3099_v17, %s2938_s6 }
  0xa0   : > { %v349_v58 = vpop.permute.xlu0 %348  ;;  %v351_v59 = vpop.permute.xlu1 %350 }
  0xa1   : > { %437 = vst.msk [vmem:[#allocation2 + $0x40] sm:$0xff] %vm428_vm1, %v349_v58  ;;  %438 = vst.msk [vmem:[#allocation2 + $0x48] sm:$0xff] %vm428_vm1, %v351_v59 }
  0xa2   : > { %723 = vrot.lane.b32.xlu0 %v3107_v19, %s2938_s6  ;;  %725 = vrot.lane.b32.xlu1 %v3110_v20, %s2938_s6 }
  0xa4   : > { %v353_v60 = vpop.permute.xlu0 %352  ;;  %v355_v61 = vpop.permute.xlu1 %354 }
  0xa5   : > { %439 = vst.msk [vmem:[#allocation2 + $0x50] sm:$0xff] %vm428_vm1, %v353_v60  ;;  %440 = vst.msk [vmem:[#allocation2 + $0x58] sm:$0xff] %vm428_vm1, %v355_v61  ;;  %v1848_v61 = vld [vmem:[%s4127_s1 + $0x10] sm:$0xff] }
  0xa6   : > { %727 = vrot.lane.b32.xlu0 %v3124_v22, %s2938_s6  ;;  %729 = vrot.lane.b32.xlu1 %v3129_v23, %s2938_s6 }
  0xa8   : > { %v357_v13 = vpop.permute.xlu0 %356  ;;  %v359_v17 = vpop.permute.xlu1 %358 }
  0xa9   : > { %441 = vst.msk [vmem:[#allocation2 + $0x60] sm:$0xff] %vm428_vm1, %v357_v13  ;;  %442 = vst.msk [vmem:[#allocation2 + $0x68] sm:$0xff] %vm428_vm1, %v359_v17  ;;  %v1849_v13 = vld [vmem:[%s4127_s1 + $0x18] sm:$0xff] }
  0xaa   : > { %731 = vrot.lane.b32.xlu0 %v3132_v24, %s2938_s6  ;;  %733 = vrot.lane.b32.xlu1 %v3135_v25, %s2938_s6 }
  0xac   : > { %v361_v62 = vpop.permute.xlu0 %360  ;;  %v363_v63 = vpop.permute.xlu1 %362 }
  0xad   : > { %443 = vst.msk [vmem:[#allocation2 + $0x70] sm:$0xff] %vm428_vm1, %v361_v62  ;;  %444 = vst.msk [vmem:[#allocation2 + $0x78] sm:$0xff] %vm428_vm1, %v363_v63 }
  0xae   : > { %735 = vrot.lane.b32.xlu0 %v3144_v26, %s2938_s6  ;;  %737 = vrot.lane.b32.xlu1 %v3147_v27, %s2938_s6 }
  0xb0   : > { %v365_v56 = vpop.permute.xlu0 %364  ;;  %v367_v57 = vpop.permute.xlu1 %366 }
  0xb1   : > { %445 = vst.msk [vmem:[#allocation2 + $0x80] sm:$0xff] %vm428_vm1, %v365_v56  ;;  %446 = vst.msk [vmem:[#allocation2 + $0x88] sm:$0xff] %vm428_vm1, %v367_v57 }
  0xb2   : > { %912 = vrot.lane.b32.xlu0 %v3031_v1, %s2939_s7  ;;  %914 = vrot.lane.b32.xlu1 %v3038_v3, %s2939_s7  ;;  %v1846_v1 = vld [vmem:[%s4127_s1] sm:$0xff]  ;;  %v1847_v3 = vld [vmem:[%s4127_s1 + $0x8] sm:$0xff] }
  0xb3   : > { %v2740_v60 = vpack.c.bf16 %v1847_v3, %v1846_v1 }
  0xb4   : > { %v369_v0 = vpop.permute.xlu0 %368  ;;  %v371_v2 = vpop.permute.xlu1 %370 }
  0xb5   : > { %447 = vst.msk [vmem:[#allocation2 + $0x90] sm:$0xff] %vm428_vm1, %v369_v0  ;;  %448 = vst.msk [vmem:[#allocation2 + $0x98] sm:$0xff] %vm428_vm1, %v371_v2  ;;  %2741 = vmatprep.subr.bf16.mxu0 %v2740_v60  ;;  %2748 = vmatprep.subr.bf16.mxu1 %v2740_v60 }
  0xb6   : > { %1105 = vrot.lane.b32.xlu0 %v3276_v12, %s2940_s8  ;;  %1107 = vrot.lane.b32.xlu1 %v3279_v16, %s2940_s8 }
  0xb7   : > { %2743 = vmatpush3.bf16.msra.mxu0 %v2740_v60  ;;  %2751 = vmatpush3.bf16.msra.mxu1 %v2740_v60 }
  0xb8   : > { %v373_v58 = vpop.permute.xlu0 %372  ;;  %v375_v59 = vpop.permute.xlu1 %374 }
  0xb9   : > { %449 = vst.msk [vmem:[#allocation2 + $0xa0] sm:$0xff] %vm428_vm1, %v373_v58  ;;  %450 = vst.msk [vmem:[#allocation2 + $0xa8] sm:$0xff] %vm428_vm1, %v375_v59 }
  0xba   : > { %1299 = vrot.lane.b32.xlu0 %v3107_v19, %s2941_s19  ;;  %1301 = vrot.lane.b32.xlu1 %v3110_v20, %s2941_s19  ;;  %v2744_v19 = vpack.c.bf16 %v1849_v13, %v1848_v61 }
  0xbc   : > { %v377_v12 = vpop.permute.xlu0 %376  ;;  %v379_v16 = vpop.permute.xlu1 %378  ;;  %2745 = vmatprep.subr.bf16.mxu0 %v2744_v19  ;;  %2749 = vmatprep.subr.bf16.mxu1 %v2744_v19 }
  0xbd   : > { %451 = vst.msk [vmem:[#allocation2 + $0xb0] sm:$0xff] %vm428_vm1, %v377_v12  ;;  %452 = vst.msk [vmem:[#allocation2 + $0xb8] sm:$0xff] %vm428_vm1, %v379_v16  ;;  %2747 = vmatpush3.bf16.msra.mxu0 %v2744_v19  ;;  %2752 = vmatpush3.bf16.msra.mxu1 %v2744_v19 }
  0xbe   : > { %1492 = vrot.lane.b32.xlu0 %v3044_v4, %s2942_s28  ;;  %916 = vrot.lane.b32.xlu1 %v3044_v4, %s2939_s7  ;;  %v1850_v4 = vld [vmem:[%s4127_s1 + $0x20] sm:$0xf] }
  0xbf   : > { %2690 = vmatprep.subr.msk.mxu0 %vm1948_vm2, %v1850_v4  ;;  %2750 = vmatprep.subr.msk.mxu1 %vm1948_vm2, %v1850_v4 }
  0xc0   : > { %v381_v20 = vpop.permute.xlu0 %380  ;;  %v383_v17 = vpop.permute.xlu1 %382 }
  0xc1   : > { %453 = vst.msk [vmem:[#allocation2 + $0xc0] sm:$0xff] %vm428_vm1, %v381_v20  ;;  %454 = vst.msk [vmem:[#allocation2 + $0xc8] sm:$0xff] %vm428_vm1, %v383_v17  ;;  %2691 = vmatpush3.msk.msra.mxu0 %vm1948_vm2, %v1850_v4  ;;  %2753 = vmatpush3.msk.msra.mxu1 %vm1948_vm2, %v1850_v4 }
  0xc2   : > { %1494 = vrot.lane.b32.xlu0 %v3047_v5, %s2942_s28  ;;  %1685 = vrot.lane.b32.xlu1 %v3286_v29, %s2943_s29 }
  0xc4   : > { %v385_v62 = vpop.permute.xlu0 %384  ;;  %v387_v63 = vpop.permute.xlu1 %386 }
  0xc5   : > { %455 = vst.msk [vmem:[#allocation2 + $0xd0] sm:$0xff] %vm428_vm1, %v385_v62  ;;  %456 = vst.msk [vmem:[#allocation2 + $0xd8] sm:$0xff] %vm428_vm1, %v387_v63 }
  0xc6   : > { %918 = vrot.lane.b32.xlu0 %v3047_v5, %s2939_s7  ;;  %1109 = vrot.lane.b32.xlu1 %v3286_v29, %s2940_s8 }
  0xc8   : > { %v389_v56 = vpop.permute.xlu0 %388  ;;  %v391_v57 = vpop.permute.xlu1 %390 }
  0xc9   : > { %457 = vst.msk [vmem:[#allocation2 + $0xe0] sm:$0xff] %vm428_vm1, %v389_v56  ;;  %458 = vst.msk [vmem:[#allocation2 + $0xe8] sm:$0xff] %vm428_vm1, %v391_v57 }
  0xca   : > { %1687 = vrot.lane.b32.xlu0 %v3289_v30, %s2943_s29  ;;  %1111 = vrot.lane.b32.xlu1 %v3289_v30, %s2940_s8 }
  0xcc   : > { %v393_v0 = vpop.permute.xlu0 %392  ;;  %v395_v2 = vpop.permute.xlu1 %394 }
  0xcd   : > { %459 = vst.msk [vmem:[#allocation2 + $0xf0] sm:$0xff] %vm428_vm1, %v393_v0  ;;  %460 = vst.msk [vmem:[#allocation2 + $0xf8] sm:$0xff] %vm428_vm1, %v395_v2 }
  0xce   : > { %1303 = vrot.lane.b32.xlu0 %v3124_v22, %s2941_s19  ;;  %1305 = vrot.lane.b32.xlu1 %v3129_v23, %s2941_s19 }
  0xd0   : > { %v526_v5 = vpop.permute.xlu0 %525  ;;  %v528_v29 = vpop.permute.xlu1 %527 }
  0xd1   : > { %622 = vst.msk [vmem:[#allocation2] sm:$0xff] %vm621_vm3, %v526_v5  ;;  %623 = vst.msk [vmem:[#allocation2 + $0x8] sm:$0xff] %vm621_vm3, %v528_v29 }
  0xd2   : > { %1496 = vrot.lane.b32.xlu0 %v3054_v6, %s2942_s28  ;;  %920 = vrot.lane.b32.xlu1 %v3054_v6, %s2939_s7 }
  0xd4   : > { %v530_v30 = vpop.permute.xlu0 %529  ;;  %v532_v58 = vpop.permute.xlu1 %531 }
  0xd5   : > { %624 = vst.msk [vmem:[#allocation2 + $0x10] sm:$0xff] %vm621_vm3, %v530_v30  ;;  %625 = vst.msk [vmem:[#allocation2 + $0x18] sm:$0xff] %vm621_vm3, %v532_v58 }
  0xd6   : > { %1498 = vrot.lane.b32.xlu0 %v3057_v7, %s2942_s28  ;;  %1689 = vrot.lane.b32.xlu1 %v3296_v42, %s2943_s29 }
  0xd8   : > { %v534_v22 = vpop.permute.xlu0 %533  ;;  %v536_v23 = vpop.permute.xlu1 %535 }
  0xd9   : > { %626 = vst.msk [vmem:[#allocation2 + $0x20] sm:$0xff] %vm621_vm3, %v534_v22  ;;  %627 = vst.msk [vmem:[#allocation2 + $0x28] sm:$0xff] %vm621_vm3, %v536_v23 }
  0xda   : > { %922 = vrot.lane.b32.xlu0 %v3057_v7, %s2939_s7  ;;  %1113 = vrot.lane.b32.xlu1 %v3296_v42, %s2940_s8 }
  0xdc   : > { %v538_v6 = vpop.permute.xlu0 %537  ;;  %v540_v59 = vpop.permute.xlu1 %539 }
  0xdd   : > { %628 = vst.msk [vmem:[#allocation2 + $0x30] sm:$0xff] %vm621_vm3, %v538_v6  ;;  %629 = vst.msk [vmem:[#allocation2 + $0x38] sm:$0xff] %vm621_vm3, %v540_v59 }
  0xde   : > { %1691 = vrot.lane.b32.xlu0 %v3299_v43, %s2943_s29  ;;  %1115 = vrot.lane.b32.xlu1 %v3299_v43, %s2940_s8 }
  0xe0   : > { %v542_v1 = vpop.permute.xlu0 %541  ;;  %v544_v3 = vpop.permute.xlu1 %543 }
  0xe1   : > { %630 = vst.msk [vmem:[#allocation2 + $0x40] sm:$0xff] %vm621_vm3, %v542_v1  ;;  %631 = vst.msk [vmem:[#allocation2 + $0x48] sm:$0xff] %vm621_vm3, %v544_v3 }
  0xe2   : > { %1307 = vrot.lane.b32.xlu0 %v3132_v24, %s2941_s19  ;;  %1309 = vrot.lane.b32.xlu1 %v3135_v25, %s2941_s19 }
  0xe4   : > { %v546_v7 = vpop.permute.xlu0 %545  ;;  %v548_v42 = vpop.permute.xlu1 %547 }
  0xe5   : > { %632 = vst.msk [vmem:[#allocation2 + $0x50] sm:$0xff] %vm621_vm3, %v546_v7  ;;  %633 = vst.msk [vmem:[#allocation2 + $0x58] sm:$0xff] %vm621_vm3, %v548_v42 }
  0xe6   : > { %1500 = vrot.lane.b32.xlu0 %v3064_v8, %s2942_s28  ;;  %924 = vrot.lane.b32.xlu1 %v3064_v8, %s2939_s7 }
  0xe8   : > { %v550_v43 = vpop.permute.xlu0 %549  ;;  %v552_v60 = vpop.permute.xlu1 %551 }
  0xe9   : > { %634 = vst.msk [vmem:[#allocation2 + $0x60] sm:$0xff] %vm621_vm3, %v550_v43  ;;  %635 = vst.msk [vmem:[#allocation2 + $0x68] sm:$0xff] %vm621_vm3, %v552_v60 }
  0xea   : > { %1502 = vrot.lane.b32.xlu0 %v3067_v9, %s2942_s28  ;;  %1693 = vrot.lane.b32.xlu1 %v3306_v46, %s2943_s29 }
  0xec   : > { %v554_v24 = vpop.permute.xlu0 %553  ;;  %v556_v25 = vpop.permute.xlu1 %555 }
  0xed   : > { %636 = vst.msk [vmem:[#allocation2 + $0x70] sm:$0xff] %vm621_vm3, %v554_v24  ;;  %637 = vst.msk [vmem:[#allocation2 + $0x78] sm:$0xff] %vm621_vm3, %v556_v25 }
  0xee   : > { %926 = vrot.lane.b32.xlu0 %v3067_v9, %s2939_s7  ;;  %1117 = vrot.lane.b32.xlu1 %v3306_v46, %s2940_s8 }
  0xf0   : > { %v558_v8 = vpop.permute.xlu0 %557  ;;  %v560_v12 = vpop.permute.xlu1 %559 }
  0xf1   : > { %638 = vst.msk [vmem:[#allocation2 + $0x80] sm:$0xff] %vm621_vm3, %v558_v8  ;;  %639 = vst.msk [vmem:[#allocation2 + $0x88] sm:$0xff] %vm621_vm3, %v560_v12 }
  0xf2   : > { %1695 = vrot.lane.b32.xlu0 %v3309_v47, %s2943_s29  ;;  %1119 = vrot.lane.b32.xlu1 %v3309_v47, %s2940_s8 }
  0xf4   : > { %v562_v16 = vpop.permute.xlu0 %561  ;;  %v564_v61 = vpop.permute.xlu1 %563 }
  0xf5   : > { %640 = vst.msk [vmem:[#allocation2 + $0x90] sm:$0xff] %vm621_vm3, %v562_v16  ;;  %641 = vst.msk [vmem:[#allocation2 + $0x98] sm:$0xff] %vm621_vm3, %v564_v61 }
  0xf6   : > { %1311 = vrot.lane.b32.xlu0 %v3144_v26, %s2941_s19  ;;  %1313 = vrot.lane.b32.xlu1 %v3147_v27, %s2941_s19 }
  0xf8   : > { %v566_v9 = vpop.permute.xlu0 %565  ;;  %v568_v46 = vpop.permute.xlu1 %567 }
  0xf9   : > { %642 = vst.msk [vmem:[#allocation2 + $0xa0] sm:$0xff] %vm621_vm3, %v566_v9  ;;  %643 = vst.msk [vmem:[#allocation2 + $0xa8] sm:$0xff] %vm621_vm3, %v568_v46  ;;  %v2590_v46 = vld [vmem:[%s3027_s30 + $0xda] sm:$0xff] }
  0xfa   : > { %1504 = vrot.lane.b32.xlu0 %v3074_v10, %s2942_s28  ;;  %928 = vrot.lane.b32.xlu1 %v3074_v10, %s2939_s7 }
  0xfc   : > { %v570_v47 = vpop.permute.xlu0 %569  ;;  %v572_v13 = vpop.permute.xlu1 %571 }
  0xfd   : > { %644 = vst.msk [vmem:[#allocation2 + $0xb0] sm:$0xff] %vm621_vm3, %v570_v47  ;;  %645 = vst.msk [vmem:[#allocation2 + $0xb8] sm:$0xff] %vm621_vm3, %v572_v13 }
  0xfe   : > { %1506 = vrot.lane.b32.xlu0 %v3077_v11, %s2942_s28  ;;  %1697 = vrot.lane.b32.xlu1 %v3316_v48, %s2943_s29 }
 0x100   : > { %v574_v26 = vpop.permute.xlu0 %573  ;;  %v576_v27 = vpop.permute.xlu1 %575 }
 0x101   : > { %646 = vst.msk [vmem:[#allocation2 + $0xc0] sm:$0xff] %vm621_vm3, %v574_v26  ;;  %647 = vst.msk [vmem:[#allocation2 + $0xc8] sm:$0xff] %vm621_vm3, %v576_v27 }
 0x102   : > { %930 = vrot.lane.b32.xlu0 %v3077_v11, %s2939_s7  ;;  %1121 = vrot.lane.b32.xlu1 %v3316_v48, %s2940_s8 }
 0x104   : > { %v578_v10 = vpop.permute.xlu0 %577  ;;  %v580_v19 = vpop.permute.xlu1 %579 }
 0x105   : > { %648 = vst.msk [vmem:[#allocation2 + $0xd0] sm:$0xff] %vm621_vm3, %v578_v10  ;;  %649 = vst.msk [vmem:[#allocation2 + $0xd8] sm:$0xff] %vm621_vm3, %v580_v19 }
 0x106   : > { %1699 = vrot.lane.b32.xlu0 %v3319_v49, %s2943_s29  ;;  %1123 = vrot.lane.b32.xlu1 %v3319_v49, %s2940_s8 }
 0x108   : > { %v582_v20 = vpop.permute.xlu0 %581  ;;  %v584_v17 = vpop.permute.xlu1 %583 }
 0x109   : > { %650 = vst.msk [vmem:[#allocation2 + $0xe0] sm:$0xff] %vm621_vm3, %v582_v20  ;;  %651 = vst.msk [vmem:[#allocation2 + $0xe8] sm:$0xff] %vm621_vm3, %v584_v17 }
 0x10a   : > { %1315 = vrot.lane.b32.xlu0 %v3150_v28, %s2941_s19  ;;  %739 = vrot.lane.b32.xlu1 %v3150_v28, %s2938_s6 }
 0x10c   : > { %v586_v11 = vpop.permute.xlu0 %585  ;;  %v588_v48 = vpop.permute.xlu1 %587 }
 0x10d   : > { %652 = vst.msk [vmem:[#allocation2 + $0xf0] sm:$0xff] %vm621_vm3, %v586_v11  ;;  %653 = vst.msk [vmem:[#allocation2 + $0xf8] sm:$0xff] %vm621_vm3, %v588_v48  ;;  %v2560_v48 = vld [vmem:[%s3027_s30 + $0xf1] sm:$0xff] }
 0x10e   : > { %1317 = vrot.lane.b32.xlu0 %v3161_v31, %s2941_s19  ;;  %1508 = vrot.lane.b32.xlu1 %v3088_v14, %s2942_s28 }
 0x110   : > { %v720_v49 = vpop.permute.xlu0 %719  ;;  %v722_v4 = vpop.permute.xlu1 %721 }
 0x111   : > { %816 = vst.msk [vmem:[#allocation2] sm:$0xff] %vm815_vm4, %v720_v49  ;;  %817 = vst.msk [vmem:[#allocation2 + $0x8] sm:$0xff] %vm815_vm4, %v722_v4 }
 0x112   : > { %741 = vrot.lane.b32.xlu0 %v3161_v31, %s2938_s6  ;;  %932 = vrot.lane.b32.xlu1 %v3088_v14, %s2939_s7 }
 0x114   : > { %v724_v28 = vpop.permute.xlu0 %723  ;;  %v726_v62 = vpop.permute.xlu1 %725 }
 0x115   : > { %818 = vst.msk [vmem:[#allocation2 + $0x10] sm:$0xff] %vm815_vm4, %v724_v28  ;;  %819 = vst.msk [vmem:[#allocation2 + $0x18] sm:$0xff] %vm815_vm4, %v726_v62 }
 0x116   : > { %1510 = vrot.lane.b32.xlu0 %v3091_v15, %s2942_s28  ;;  %1701 = vrot.lane.b32.xlu1 %v3326_v50, %s2943_s29 }
 0x118   : > { %v728_v63 = vpop.permute.xlu0 %727  ;;  %v730_v56 = vpop.permute.xlu1 %729 }
 0x119   : > { %820 = vst.msk [vmem:[#allocation2 + $0x20] sm:$0xff] %vm815_vm4, %v728_v63  ;;  %821 = vst.msk [vmem:[#allocation2 + $0x28] sm:$0xff] %vm815_vm4, %v730_v56  ;;  %v2592_v56 = vld [vmem:[%s3027_s30 + $0xf2] sm:$0xff] }
 0x11a   : > { %934 = vrot.lane.b32.xlu0 %v3091_v15, %s2939_s7  ;;  %1125 = vrot.lane.b32.xlu1 %v3326_v50, %s2940_s8 }
 0x11c   : > { %v732_v14 = vpop.permute.xlu0 %731  ;;  %v734_v31 = vpop.permute.xlu1 %733 }
 0x11d   : > { %822 = vst.msk [vmem:[#allocation2 + $0x30] sm:$0xff] %vm815_vm4, %v732_v14  ;;  %823 = vst.msk [vmem:[#allocation2 + $0x38] sm:$0xff] %vm815_vm4, %v734_v31 }
 0x11e   : > { %1703 = vrot.lane.b32.xlu0 %v3329_v51, %s2943_s29  ;;  %1127 = vrot.lane.b32.xlu1 %v3329_v51, %s2940_s8 }
 0x120   : > { %v736_v57 = vpop.permute.xlu0 %735  ;;  %v738_v0 = vpop.permute.xlu1 %737 }
 0x121   : > { %824 = vst.msk [vmem:[#allocation2 + $0x40] sm:$0xff] %vm815_vm4, %v736_v57  ;;  %825 = vst.msk [vmem:[#allocation2 + $0x48] sm:$0xff] %vm815_vm4, %v738_v0 }
 0x122   : > { %1319 = vrot.lane.b32.xlu0 %v3164_v32, %s2941_s19  ;;  %743 = vrot.lane.b32.xlu1 %v3164_v32, %s2938_s6 }
 0x124   : > { %v913_v15 = vpop.permute.xlu0 %912  ;;  %v915_v50 = vpop.permute.xlu1 %914 }
 0x125   : > { %1009 = vst.msk [vmem:[#allocation2] sm:$0xff] %vm1008_vm5, %v913_v15  ;;  %1010 = vst.msk [vmem:[#allocation2 + $0x8] sm:$0xff] %vm1008_vm5, %v915_v50 }
 0x126   : > { %1321 = vrot.lane.b32.xlu0 %v3167_v33, %s2941_s19  ;;  %1512 = vrot.lane.b32.xlu1 %v3102_v18, %s2942_s28 }
 0x128   : > { %v1106_v51 = vpop.permute.xlu0 %1105  ;;  %v1108_v2 = vpop.permute.xlu1 %1107 }
 0x129   : > { %1202 = vst.msk [vmem:[#allocation2] sm:$0xff] %vm1201_vm6, %v1106_v51  ;;  %1203 = vst.msk [vmem:[#allocation2 + $0x8] sm:$0xff] %vm1201_vm6, %v1108_v2 }
 0x12a   : > { %745 = vrot.lane.b32.xlu0 %v3167_v33, %s2938_s6  ;;  %936 = vrot.lane.b32.xlu1 %v3102_v18, %s2939_s7 }
 0x12c   : > { %v1300_v32 = vpop.permute.xlu0 %1299  ;;  %v1302_v5 = vpop.permute.xlu1 %1301 }
 0x12d   : > { %1396 = vst.msk [vmem:[#allocation2] sm:$0xff] %vm1395_vm7, %v1300_v32  ;;  %1397 = vst.msk [vmem:[#allocation2 + $0x8] sm:$0xff] %vm1395_vm7, %v1302_v5 }
 0x12e   : > { %1514 = vrot.lane.b32.xlu0 %v3117_v21, %s2942_s28  ;;  %1705 = vrot.lane.b32.xlu1 %v3336_v52, %s2943_s29 }
 0x130   : > { %v1493_v29 = vpop.permute.xlu0 %1492  ;;  %v917_v30 = vpop.permute.xlu1 %916 }
 0x131   : > { %1589 = vst.msk [vmem:[#allocation2] sm:$0xff] %vm1588_vm8, %v1493_v29  ;;  %v2562_v29 = vld [vmem:[%s3027_s30 + $0x109] sm:$0xff] }
 0x132   : > { %1011 = vst.msk [vmem:[#allocation2 + $0x10] sm:$0xff] %vm1008_vm5, %v917_v30  ;;  %938 = vrot.lane.b32.xlu0 %v3117_v21, %s2939_s7  ;;  %1129 = vrot.lane.b32.xlu1 %v3336_v52, %s2940_s8  ;;  %v2556_v21 = vld [vmem:[%s3027_s30 + $0xc1] sm:$0xff] }
 0x134   : > { %v1495_v18 = vpop.permute.xlu0 %1494  ;;  %v1686_v33 = vpop.permute.xlu1 %1685 }
 0x135   : > { %1590 = vst.msk [vmem:[#allocation2 + $0x8] sm:$0xff] %vm1588_vm8, %v1495_v18 }
 0x136   : > { %1782 = vst.msk [vmem:[#allocation2] sm:$0xff] %vm1781_vm9, %v1686_v33  ;;  %1707 = vrot.lane.b32.xlu0 %v3339_v53, %s2943_s29  ;;  %1131 = vrot.lane.b32.xlu1 %v3339_v53, %s2940_s8 }
 0x138   : > { %v919_v58 = vpop.permute.xlu0 %918  ;;  %v1110_v22 = vpop.permute.xlu1 %1109 }
 0x139   : > { %1012 = vst.msk [vmem:[#allocation2 + $0x18] sm:$0xff] %vm1008_vm5, %v919_v58 }
 0x13a   : > { %1204 = vst.msk [vmem:[#allocation2 + $0x10] sm:$0xff] %vm1201_vm6, %v1110_v22  ;;  %1323 = vrot.lane.b32.xlu0 %v3180_v34, %s2941_s19  ;;  %747 = vrot.lane.b32.xlu1 %v3180_v34, %s2938_s6  ;;  %v2557_v34 = vld [vmem:[%s3027_s30 + $0xc9] sm:$0xff] }
 0x13b   : > { %v2594_v22 = vld [vmem:[%s3027_s30 + $0x10a] sm:$0xff] }
 0x13c   : > { %v1688_v52 = vpop.permute.xlu0 %1687  ;;  %v1112_v23 = vpop.permute.xlu1 %1111 }
 0x13d   : > { %v1814_v6 = vld [vmem:[#allocation2] sm:$0xff]  ;;  %1783 = vst.msk [vmem:[#allocation2 + $0x8] sm:$0xff] %vm1781_vm9, %v1688_v52 }
 0x13e   : > { %1205 = vst.msk [vmem:[#allocation2 + $0x18] sm:$0xff] %vm1201_vm6, %v1112_v23  ;;  %2692 = vmatprep.mubr.msk.f32.mxu0 %vm1851_vm10, %v1814_v6  ;;  %1325 = vrot.lane.b32.xlu0 %v3183_v35, %s2941_s19 }
 0x13f   : > { %1516 = vrot.lane.b32.xlu1 %v2556_v21, %s2942_s28 }
 0x140   : > { %v1304_v53 = vpop.permute.xlu0 %1303  ;;  %v1306_v59 = vpop.permute.xlu1 %1305 }
 0x141   : > { %1398 = vst.msk [vmem:[#allocation2 + $0x10] sm:$0xff] %vm1395_vm7, %v1304_v53  ;;  %1399 = vst.msk [vmem:[#allocation2 + $0x18] sm:$0xff] %vm1395_vm7, %v1306_v59 }
 0x142   : > { %749 = vrot.lane.b32.xlu0 %v3183_v35, %s2938_s6 }
 0x143   : > { %940 = vrot.lane.b32.xlu1 %v2556_v21, %s2939_s7 }
 0x144   : > { %v1497_v1 = vpop.permute.xlu0 %1496  ;;  %v921_v3 = vpop.permute.xlu1 %920  ;;  %v1815_v7 = vld [vmem:[#allocation2 + $0x8] sm:$0xff] }
 0x145   : > { %1591 = vst.msk [vmem:[#allocation2 + $0x10] sm:$0xff] %vm1588_vm8, %v1497_v1  ;;  %2693 = vmatmul.mubr.msk.f32.vlgmr.msra.gmra.mrb[0].mxu0 %vm1851_vm10, %v1815_v7 }
 0x146   : > { %1013 = vst.msk [vmem:[#allocation2 + $0x20] sm:$0xff] %vm1008_vm5, %v921_v3  ;;  %1518 = vrot.lane.b32.xlu0 %v2557_v34, %s2942_s28 }
 0x147   : > { %1709 = vrot.lane.b32.xlu1 %v3346_v54, %s2943_s29 }
 0x148   : > { %v1499_v42 = vpop.permute.xlu0 %1498  ;;  %v1690_v43 = vpop.permute.xlu1 %1689 }
 0x149   : > { %1592 = vst.msk [vmem:[#allocation2 + $0x18] sm:$0xff] %vm1588_vm8, %v1499_v42  ;;  %v2564_v42 = vld [vmem:[%s3027_s30 + $0x121] sm:$0xff] }
 0x14a   : > { %1784 = vst.msk [vmem:[#allocation2 + $0x10] sm:$0xff] %vm1781_vm9, %v1690_v43  ;;  %942 = vrot.lane.b32.xlu0 %v2557_v34, %s2939_s7 }
 0x14b   : > { %1133 = vrot.lane.b32.xlu1 %v3346_v54, %s2940_s8  ;;  %v2558_v54 = vld [vmem:[%s3027_s30 + $0xd9] sm:$0xff] }
 0x14c   : > { %v923_v35 = vpop.permute.xlu0 %922  ;;  %v1114_v60 = vpop.permute.xlu1 %1113 }
 0x14d   : > { %1014 = vst.msk [vmem:[#allocation2 + $0x28] sm:$0xff] %vm1008_vm5, %v923_v35 }
 0x14e   : > { %1206 = vst.msk [vmem:[#allocation2 + $0x20] sm:$0xff] %vm1201_vm6, %v1114_v60  ;;  %1711 = vrot.lane.b32.xlu0 %v3349_v55, %s2943_s29 }
 0x14f   : > { %1135 = vrot.lane.b32.xlu1 %v3349_v55, %s2940_s8 }
 0x150   : > { %v1692_v24 = vpop.permute.xlu0 %1691  ;;  %v1116_v25 = vpop.permute.xlu1 %1115 }
 0x151   : > { %v1816_v8 = vld [vmem:[#allocation2 + $0x10] sm:$0xff]  ;;  %1785 = vst.msk [vmem:[#allocation2 + $0x18] sm:$0xff] %vm1781_vm9, %v1692_v24 }
 0x152   : > { %1207 = vst.msk [vmem:[#allocation2 + $0x28] sm:$0xff] %vm1201_vm6, %v1116_v25  ;;  %2695 = vmatprep.mubr.msk.f32.mxu0 %vm1851_vm10, %v1816_v8  ;;  %1327 = vrot.lane.b32.xlu0 %v3190_v36, %s2941_s19  ;;  %v2596_v25 = vld [vmem:[%s3027_s30 + $0x122] sm:$0xff] }
 0x153   : > { %751 = vrot.lane.b32.xlu1 %v3190_v36, %s2938_s6  ;;  %v2559_v36 = vld [vmem:[%s3027_s30 + $0xe1] sm:$0xff] }
 0x154   : > { %v1308_v12 = vpop.permute.xlu0 %1307  ;;  %v1310_v55 = vpop.permute.xlu1 %1309 }
 0x155   : > { %1400 = vst.msk [vmem:[#allocation2 + $0x20] sm:$0xff] %vm1395_vm7, %v1308_v12  ;;  %1401 = vst.msk [vmem:[#allocation2 + $0x28] sm:$0xff] %vm1395_vm7, %v1310_v55 }
 0x156   : > { %1329 = vrot.lane.b32.xlu0 %v3193_v37, %s2941_s19 }
 0x157   : > { %1520 = vrot.lane.b32.xlu1 %v2558_v54, %s2942_s28 }
 0x158   : > { %v1501_v16 = vpop.permute.xlu0 %1500  ;;  %v925_v61 = vpop.permute.xlu1 %924  ;;  %v1817_v9 = vld [vmem:[#allocation2 + $0x18] sm:$0xff] }
 0x159   : > { %1593 = vst.msk [vmem:[#allocation2 + $0x20] sm:$0xff] %vm1588_vm8, %v1501_v16  ;;  %2696 = vmatmul.mubr.msk.f32.gmra.mrb[2].mxu0 %vm1851_vm10, %v1817_v9 }
 0x15a   : > { %1015 = vst.msk [vmem:[#allocation2 + $0x30] sm:$0xff] %vm1008_vm5, %v925_v61  ;;  %753 = vrot.lane.b32.xlu0 %v3193_v37, %s2938_s6  ;;  %v2591_v37 = vld [vmem:[%s3027_s30 + $0xe2] sm:$0xff] }
 0x15b   : > { %944 = vrot.lane.b32.xlu1 %v2558_v54, %s2939_s7 }
 0x15c   : > { %v1503_v47 = vpop.permute.xlu0 %1502  ;;  %v1694_v13 = vpop.permute.xlu1 %1693 }
 0x15d   : > { %1594 = vst.msk [vmem:[#allocation2 + $0x28] sm:$0xff] %vm1588_vm8, %v1503_v47 }
 0x15e   : > { %1786 = vst.msk [vmem:[#allocation2 + $0x20] sm:$0xff] %vm1781_vm9, %v1694_v13  ;;  %1522 = vrot.lane.b32.xlu0 %v2559_v36, %s2942_s28 }
 0x15f   : > { %1713 = vrot.lane.b32.xlu1 %v2590_v46, %s2943_s29 }
 0x160   : > { %v927_v26 = vpop.permute.xlu0 %926  ;;  %v1118_v27 = vpop.permute.xlu1 %1117 }
 0x161   : > { %1016 = vst.msk [vmem:[#allocation2 + $0x38] sm:$0xff] %vm1008_vm5, %v927_v26  ;;  %v2535_v26 = vld [vmem:[%s3027_s30 + $0x140] sm:$0xff] }
 0x162   : > { %1208 = vst.msk [vmem:[#allocation2 + $0x30] sm:$0xff] %vm1201_vm6, %v1118_v27  ;;  %946 = vrot.lane.b32.xlu0 %v2559_v36, %s2939_s7  ;;  %v2534_v36 = vld [vmem:[%s3027_s30 + $0x138] sm:$0xff] }
 0x163   : > { %1137 = vrot.lane.b32.xlu1 %v2590_v46, %s2940_s8  ;;  %v2566_v27 = vld [vmem:[%s3027_s30 + $0x139] sm:$0xff] }
 0x164   : > { %v1696_v10 = vpop.permute.xlu0 %1695  ;;  %v1120_v19 = vpop.permute.xlu1 %1119 }
 0x165   : > { %v1818_v20 = vld [vmem:[#allocation2 + $0x20] sm:$0xff]  ;;  %1787 = vst.msk [vmem:[#allocation2 + $0x28] sm:$0xff] %vm1781_vm9, %v1696_v10 }
 0x166   : > { %1209 = vst.msk [vmem:[#allocation2 + $0x38] sm:$0xff] %vm1201_vm6, %v1120_v19  ;;  %2698 = vmatprep.mubr.msk.f32.mxu0 %vm1851_vm10, %v1818_v20  ;;  %1715 = vrot.lane.b32.xlu0 %v2591_v37, %s2943_s29 }
 0x167   : > { %1139 = vrot.lane.b32.xlu1 %v2591_v37, %s2940_s8 }
 0x168   : > { %v1312_v17 = vpop.permute.xlu0 %1311  ;;  %v1314_v11 = vpop.permute.xlu1 %1313 }
 0x169   : > { %1402 = vst.msk [vmem:[#allocation2 + $0x30] sm:$0xff] %vm1395_vm7, %v1312_v17  ;;  %1403 = vst.msk [vmem:[#allocation2 + $0x38] sm:$0xff] %vm1395_vm7, %v1314_v11  ;;  %v2567_v17 = vld [vmem:[%s3027_s30 + $0x141] sm:$0xff] }
 0x16a   : > { %1331 = vrot.lane.b32.xlu0 %v3196_v38, %s2941_s19  ;;  %v2598_v11 = vld [vmem:[%s3027_s30 + $0x13a] sm:$0xff] }
 0x16b   : > { %755 = vrot.lane.b32.xlu1 %v3196_v38, %s2938_s6  ;;  %v2561_v38 = vld [vmem:[%s3027_s30 + $0xf9] sm:$0xff] }
 0x16c   : > { %v1505_v49 = vpop.permute.xlu0 %1504  ;;  %v929_v4 = vpop.permute.xlu1 %928  ;;  %v1819_v28 = vld [vmem:[#allocation2 + $0x28] sm:$0xff] }
 0x16d   : > { %1595 = vst.msk [vmem:[#allocation2 + $0x30] sm:$0xff] %vm1588_vm8, %v1505_v49  ;;  %2699 = vmatmul.mubr.msk.f32.gmra.mrb[4].mxu0 %vm1851_vm10, %v1819_v28 }
 0x16e   : > { %1017 = vst.msk [vmem:[#allocation2 + $0x40] sm:$0xff] %vm1008_vm5, %v929_v4  ;;  %1333 = vrot.lane.b32.xlu0 %v3205_v39, %s2941_s19 }
 0x16f   : > { %1524 = vrot.lane.b32.xlu1 %v2560_v48, %s2942_s28 }
 0x170   : > { %v1507_v62 = vpop.permute.xlu0 %1506  ;;  %v1698_v63 = vpop.permute.xlu1 %1697 }
 0x171   : > { %1596 = vst.msk [vmem:[#allocation2 + $0x38] sm:$0xff] %vm1588_vm8, %v1507_v62 }
 0x172   : > { %1788 = vst.msk [vmem:[#allocation2 + $0x30] sm:$0xff] %vm1781_vm9, %v1698_v63  ;;  %757 = vrot.lane.b32.xlu0 %v3205_v39, %s2938_s6  ;;  %v2593_v39 = vld [vmem:[%s3027_s30 + $0xfa] sm:$0xff]  ;;  %v2599_v63 = vld [vmem:[%s3027_s30 + $0x142] sm:$0xff] }
 0x173   : > { %948 = vrot.lane.b32.xlu1 %v2560_v48, %s2939_s7 }
 0x174   : > { %v931_v14 = vpop.permute.xlu0 %930  ;;  %v1122_v31 = vpop.permute.xlu1 %1121 }
 0x175   : > { %1018 = vst.msk [vmem:[#allocation2 + $0x48] sm:$0xff] %vm1008_vm5, %v931_v14  ;;  %v2536_v14 = vld [vmem:[%s3027_s30 + $0x150] sm:$0xff] }
 0x176   : > { %1210 = vst.msk [vmem:[#allocation2 + $0x40] sm:$0xff] %vm1201_vm6, %v1122_v31  ;;  %1526 = vrot.lane.b32.xlu0 %v2561_v38, %s2942_s28 }
 0x177   : > { %1717 = vrot.lane.b32.xlu1 %v2592_v56, %s2943_s29 }
 0x178   : > { %v1700_v57 = vpop.permute.xlu0 %1699  ;;  %v1124_v0 = vpop.permute.xlu1 %1123 }
 0x179   : > { %v1820_v15 = vld [vmem:[#allocation2 + $0x30] sm:$0xff]  ;;  %1789 = vst.msk [vmem:[#allocation2 + $0x38] sm:$0xff] %vm1781_vm9, %v1700_v57 }
 0x17a   : > { %1211 = vst.msk [vmem:[#allocation2 + $0x48] sm:$0xff] %vm1201_vm6, %v1124_v0  ;;  %2701 = vmatprep.mubr.msk.f32.mxu0 %vm1851_vm10, %v1820_v15  ;;  %950 = vrot.lane.b32.xlu0 %v2561_v38, %s2939_s7  ;;  %v2537_v15 = vld [vmem:[%s3027_s30 + $0x158] sm:$0xff] }
 0x17b   : > { %1141 = vrot.lane.b32.xlu1 %v2592_v56, %s2940_s8 }
 0x17c   : > { %v1316_v50 = vpop.permute.xlu0 %1315  ;;  %v740_v51 = vpop.permute.xlu1 %739 }
 0x17d   : > { %1404 = vst.msk [vmem:[#allocation2 + $0x40] sm:$0xff] %vm1395_vm7, %v1316_v50 }
 0x17e   : > { %826 = vst.msk [vmem:[#allocation2 + $0x50] sm:$0xff] %vm815_vm4, %v740_v51  ;;  %1719 = vrot.lane.b32.xlu0 %v2593_v39, %s2943_s29 }
 0x17f   : > { %1143 = vrot.lane.b32.xlu1 %v2593_v39, %s2940_s8  ;;  %v2568_v39 = vld [vmem:[%s3027_s30 + $0x151] sm:$0xff] }
 0x180   : > { %v1318_v2 = vpop.permute.xlu0 %1317  ;;  %v1509_v32 = vpop.permute.xlu1 %1508  ;;  %v1821_v5 = vld [vmem:[#allocation2 + $0x38] sm:$0xff] }
 0x181   : > { %1405 = vst.msk [vmem:[#allocation2 + $0x48] sm:$0xff] %vm1395_vm7, %v1318_v2  ;;  %2702 = vmatmul.mubr.msk.f32.gmra.mrb[6].mxu0 %vm1851_vm10, %v1821_v5  ;;  %v2569_v5 = vld [vmem:[%s3027_s30 + $0x159] sm:$0xff] }
 0x182   : > { %1597 = vst.msk [vmem:[#allocation2 + $0x40] sm:$0xff] %vm1588_vm8, %v1509_v32  ;;  %1335 = vrot.lane.b32.xlu0 %v3208_v40, %s2941_s19 }
 0x183   : > { %759 = vrot.lane.b32.xlu1 %v3208_v40, %s2938_s6  ;;  %v2563_v40 = vld [vmem:[%s3027_s30 + $0x111] sm:$0xff] }
 0x184   : > { %v742_v30 = vpop.permute.xlu0 %741  ;;  %v933_v18 = vpop.permute.xlu1 %932 }
 0x185   : > { %827 = vst.msk [vmem:[#allocation2 + $0x58] sm:$0xff] %vm815_vm4, %v742_v30 }
 0x186   : > { %1019 = vst.msk [vmem:[#allocation2 + $0x50] sm:$0xff] %vm1008_vm5, %v933_v18  ;;  %1337 = vrot.lane.b32.xlu0 %v3211_v41, %s2941_s19 }
 0x187   : > { %1528 = vrot.lane.b32.xlu1 %v2562_v29, %s2942_s28 }
 0x188   : > { %v1511_v33 = vpop.permute.xlu0 %1510  ;;  %v1702_v58 = vpop.permute.xlu1 %1701 }
 0x189   : > { %1598 = vst.msk [vmem:[#allocation2 + $0x48] sm:$0xff] %vm1588_vm8, %v1511_v33 }
 0x18a   : > { %1790 = vst.msk [vmem:[#allocation2 + $0x40] sm:$0xff] %vm1781_vm9, %v1702_v58  ;;  %761 = vrot.lane.b32.xlu0 %v3211_v41, %s2938_s6  ;;  %v2595_v41 = vld [vmem:[%s3027_s30 + $0x112] sm:$0xff] }
 0x18b   : > { %952 = vrot.lane.b32.xlu1 %v2562_v29, %s2939_s7  ;;  %v2600_v29 = vld [vmem:[%s3027_s30 + $0x152] sm:$0xff] }
 0x18c   : > { %v935_v21 = vpop.permute.xlu0 %934  ;;  %v1126_v52 = vpop.permute.xlu1 %1125 }
 0x18d   : > { %1020 = vst.msk [vmem:[#allocation2 + $0x58] sm:$0xff] %vm1008_vm5, %v935_v21 }
 0x18e   : > { %1212 = vst.msk [vmem:[#allocation2 + $0x50] sm:$0xff] %vm1201_vm6, %v1126_v52  ;;  %1530 = vrot.lane.b32.xlu0 %v2563_v40, %s2942_s28 }
 0x18f   : > { %1721 = vrot.lane.b32.xlu1 %v2594_v22, %s2943_s29 }
 0x190   : > { %v1704_v23 = vpop.permute.xlu0 %1703  ;;  %v1128_v6 = vpop.permute.xlu1 %1127 }
 0x191   : > { %v1822_v53 = vld [vmem:[#allocation2 + $0x40] sm:$0xff]  ;;  %1791 = vst.msk [vmem:[#allocation2 + $0x48] sm:$0xff] %vm1781_vm9, %v1704_v23  ;;  %v2538_v23 = vld [vmem:[%s3027_s30 + $0x168] sm:$0xff] }
 0x192   : > { %1213 = vst.msk [vmem:[#allocation2 + $0x58] sm:$0xff] %vm1201_vm6, %v1128_v6  ;;  %2704 = vmatprep.mubr.msk.f32.mxu0 %vm1851_vm10, %v1822_v53  ;;  %954 = vrot.lane.b32.xlu0 %v2563_v40, %s2939_s7 }
 0x193   : > { %1145 = vrot.lane.b32.xlu1 %v2594_v22, %s2940_s8  ;;  %v2601_v22 = vld [vmem:[%s3027_s30 + $0x15a] sm:$0xff] }
 0x194   : > { %v1320_v59 = vpop.permute.xlu0 %1319  ;;  %v744_v34 = vpop.permute.xlu1 %743 }
 0x195   : > { %1406 = vst.msk [vmem:[#allocation2 + $0x50] sm:$0xff] %vm1395_vm7, %v1320_v59  ;;  %v2539_v59 = vld [vmem:[%s3027_s30 + $0x170] sm:$0xff] }
 0x196   : > { %828 = vst.msk [vmem:[#allocation2 + $0x60] sm:$0xff] %vm815_vm4, %v744_v34  ;;  %1723 = vrot.lane.b32.xlu0 %v2595_v41, %s2943_s29  ;;  %v2570_v34 = vld [vmem:[%s3027_s30 + $0x169] sm:$0xff] }
 0x197   : > { %1147 = vrot.lane.b32.xlu1 %v2595_v41, %s2940_s8 }
 0x198   : > { %v1322_v1 = vpop.permute.xlu0 %1321  ;;  %v1513_v3 = vpop.permute.xlu1 %1512  ;;  %v1823_v7 = vld [vmem:[#allocation2 + $0x48] sm:$0xff] }
 0x199   : > { %1407 = vst.msk [vmem:[#allocation2 + $0x58] sm:$0xff] %vm1395_vm7, %v1322_v1  ;;  %2705 = vmatmul.mubr.msk.f32.gmra.mrb[8].mxu0 %vm1851_vm10, %v1823_v7 }
 0x19a   : > { %1599 = vst.msk [vmem:[#allocation2 + $0x50] sm:$0xff] %vm1588_vm8, %v1513_v3  ;;  %1339 = vrot.lane.b32.xlu0 %v3224_v44, %s2941_s19 }
 0x19b   : > { %763 = vrot.lane.b32.xlu1 %v3224_v44, %s2938_s6  ;;  %v2565_v44 = vld [vmem:[%s3027_s30 + $0x129] sm:$0xff] }
 0x19c   : > { %v746_v43 = vpop.permute.xlu0 %745  ;;  %v937_v35 = vpop.permute.xlu1 %936 }
 0x19d   : > { %829 = vst.msk [vmem:[#allocation2 + $0x68] sm:$0xff] %vm815_vm4, %v746_v43  ;;  %v2571_v43 = vld [vmem:[%s3027_s30 + $0x171] sm:$0xff] }
 0x19e   : > { %1021 = vst.msk [vmem:[#allocation2 + $0x60] sm:$0xff] %vm1008_vm5, %v937_v35  ;;  %1341 = vrot.lane.b32.xlu0 %v3229_v45, %s2941_s19  ;;  %v2602_v35 = vld [vmem:[%s3027_s30 + $0x16a] sm:$0xff] }
 0x19f   : > { %1532 = vrot.lane.b32.xlu1 %v2564_v42, %s2942_s28 }
 0x1a0   : > { %v1515_v60 = vpop.permute.xlu0 %1514  ;;  %v1706_v24 = vpop.permute.xlu1 %1705 }
 0x1a1   : > { %1600 = vst.msk [vmem:[#allocation2 + $0x58] sm:$0xff] %vm1588_vm8, %v1515_v60 }
 0x1a2   : > { %1792 = vst.msk [vmem:[#allocation2 + $0x50] sm:$0xff] %vm1781_vm9, %v1706_v24  ;;  %765 = vrot.lane.b32.xlu0 %v3229_v45, %s2938_s6  ;;  %v2597_v45 = vld [vmem:[%s3027_s30 + $0x12a] sm:$0xff] }
 0x1a3   : > { %956 = vrot.lane.b32.xlu1 %v2564_v42, %s2939_s7 }
 0x1a4   : > { %v939_v8 = vpop.permute.xlu0 %938  ;;  %v1130_v54 = vpop.permute.xlu1 %1129 }
 0x1a5   : > { %1022 = vst.msk [vmem:[#allocation2 + $0x68] sm:$0xff] %vm1008_vm5, %v939_v8 }
 0x1a6   : > { %1214 = vst.msk [vmem:[#allocation2 + $0x60] sm:$0xff] %vm1201_vm6, %v1130_v54  ;;  %1534 = vrot.lane.b32.xlu0 %v2565_v44, %s2942_s28  ;;  %v2603_v54 = vld [vmem:[%s3027_s30 + $0x172] sm:$0xff] }
 0x1a7   : > { %1725 = vrot.lane.b32.xlu1 %v2596_v25, %s2943_s29 }
 0x1a8   : > { %v1708_v12 = vpop.permute.xlu0 %1707  ;;  %v1132_v55 = vpop.permute.xlu1 %1131 }
 0x1a9   : > { %v1824_v16 = vld [vmem:[#allocation2 + $0x50] sm:$0xff]  ;;  %1793 = vst.msk [vmem:[#allocation2 + $0x58] sm:$0xff] %vm1781_vm9, %v1708_v12 }
 0x1aa   : > { %1215 = vst.msk [vmem:[#allocation2 + $0x68] sm:$0xff] %vm1201_vm6, %v1132_v55  ;;  %2707 = vmatprep.mubr.msk.f32.mxu0 %vm1851_vm10, %v1824_v16  ;;  %958 = vrot.lane.b32.xlu0 %v2565_v44, %s2939_s7  ;;  %v2540_v16 = vld [vmem:[%s3027_s30 + $0x180] sm:$0xff] }
 0x1ab   : > { %1149 = vrot.lane.b32.xlu1 %v2596_v25, %s2940_s8 }
 0x1ac   : > { %v1324_v61 = vpop.permute.xlu0 %1323  ;;  %v748_v9 = vpop.permute.xlu1 %747 }
 0x1ad   : > { %1408 = vst.msk [vmem:[#allocation2 + $0x60] sm:$0xff] %vm1395_vm7, %v1324_v61 }
 0x1ae   : > { %830 = vst.msk [vmem:[#allocation2 + $0x70] sm:$0xff] %vm815_vm4, %v748_v9  ;;  %1727 = vrot.lane.b32.xlu0 %v2597_v45, %s2943_s29 }
 0x1af   : > { %1151 = vrot.lane.b32.xlu1 %v2597_v45, %s2940_s8 }
 0x1b0   : > { %v1326_v46 = vpop.permute.xlu0 %1325  ;;  %v1825_v13 = vld [vmem:[#allocation2 + $0x58] sm:$0xff] }
 0x1b1   : > { %v1517_v47 = vpop.permute.xlu1 %1516  ;;  %1409 = vst.msk [vmem:[#allocation2 + $0x68] sm:$0xff] %vm1395_vm7, %v1326_v46  ;;  %2708 = vmatmul.mubr.msk.f32.gmra.mrb[10].mxu0 %vm1851_vm10, %v1825_v13  ;;  %v2572_v46 = vld [vmem:[%s3027_s30 + $0x181] sm:$0xff] }
 0x1b2   : > { %1601 = vst.msk [vmem:[#allocation2 + $0x60] sm:$0xff] %vm1588_vm8, %v1517_v47  ;;  %1343 = vrot.lane.b32.xlu0 %v2534_v36, %s2941_s19 }
 0x1b3   : > { %767 = vrot.lane.b32.xlu1 %v2534_v36, %s2938_s6  ;;  %v2541_v36 = vld [vmem:[%s3027_s30 + $0x188] sm:$0xff] }
 0x1b4   : > { %v750_v37 = vpop.permute.xlu0 %749 }
 0x1b5   : > { %v941_v10 = vpop.permute.xlu1 %940  ;;  %831 = vst.msk [vmem:[#allocation2 + $0x78] sm:$0xff] %vm815_vm4, %v750_v37  ;;  %v2573_v37 = vld [vmem:[%s3027_s30 + $0x189] sm:$0xff] }
 0x1b6   : > { %1023 = vst.msk [vmem:[#allocation2 + $0x70] sm:$0xff] %vm1008_vm5, %v941_v10  ;;  %1345 = vrot.lane.b32.xlu0 %v2535_v26, %s2941_s19  ;;  %v2604_v10 = vld [vmem:[%s3027_s30 + $0x182] sm:$0xff] }
 0x1b7   : > { %1536 = vrot.lane.b32.xlu1 %v2566_v27, %s2942_s28 }
 0x1b8   : > { %v1519_v19 = vpop.permute.xlu0 %1518 }
 0x1b9   : > { %v1710_v20 = vpop.permute.xlu1 %1709  ;;  %1602 = vst.msk [vmem:[#allocation2 + $0x68] sm:$0xff] %vm1588_vm8, %v1519_v19 }
 0x1ba   : > { %1794 = vst.msk [vmem:[#allocation2 + $0x60] sm:$0xff] %vm1781_vm9, %v1710_v20  ;;  %769 = vrot.lane.b32.xlu0 %v2535_v26, %s2938_s6 }
 0x1bb   : > { %960 = vrot.lane.b32.xlu1 %v2566_v27, %s2939_s7 }
 0x1bc   : > { %v943_v48 = vpop.permute.xlu0 %942 }
 0x1bd   : > { %v1134_v49 = vpop.permute.xlu1 %1133  ;;  %1024 = vst.msk [vmem:[#allocation2 + $0x78] sm:$0xff] %vm1008_vm5, %v943_v48 }
 0x1be   : > { %1216 = vst.msk [vmem:[#allocation2 + $0x70] sm:$0xff] %vm1201_vm6, %v1134_v49  ;;  %1538 = vrot.lane.b32.xlu0 %v2567_v17, %s2942_s28  ;;  %v2605_v49 = vld [vmem:[%s3027_s30 + $0x18a] sm:$0xff] }
 0x1bf   : > { %1729 = vrot.lane.b32.xlu1 %v2598_v11, %s2943_s29 }
 0x1c0   : > { %v1712_v4 = vpop.permute.xlu0 %1711 }
 0x1c1   : > { %v1136_v28 = vpop.permute.xlu1 %1135  ;;  %v1826_v62 = vld [vmem:[#allocation2 + $0x60] sm:$0xff]  ;;  %1795 = vst.msk [vmem:[#allocation2 + $0x68] sm:$0xff] %vm1781_vm9, %v1712_v4 }
 0x1c2   : > { %1217 = vst.msk [vmem:[#allocation2 + $0x78] sm:$0xff] %vm1201_vm6, %v1136_v28  ;;  %2710 = vmatprep.mubr.msk.f32.mxu0 %vm1851_vm10, %v1826_v62  ;;  %962 = vrot.lane.b32.xlu0 %v2567_v17, %s2939_s7  ;;  %v2542_v62 = vld [vmem:[%s3027_s30 + $0x198] sm:$0xff] }
 0x1c3   : > { %1153 = vrot.lane.b32.xlu1 %v2598_v11, %s2940_s8 }
 0x1c4   : > { %v1328_v38 = vpop.permute.xlu0 %1327 }
 0x1c5   : > { %v752_v56 = vpop.permute.xlu1 %751  ;;  %1410 = vst.msk [vmem:[#allocation2 + $0x70] sm:$0xff] %vm1395_vm7, %v1328_v38 }
 0x1c6   : > { %832 = vst.msk [vmem:[#allocation2 + $0x80] sm:$0xff] %vm815_vm4, %v752_v56  ;;  %1731 = vrot.lane.b32.xlu0 %v2599_v63, %s2943_s29 }
 0x1c7   : > { %1155 = vrot.lane.b32.xlu1 %v2599_v63, %s2940_s8  ;;  %v2543_v63 = vld [vmem:[%s3027_s30 + $0x1a0] sm:$0xff] }
 0x1c8   : > { %v1330_v31 = vpop.permute.xlu0 %1329  ;;  %v1827_v0 = vld [vmem:[#allocation2 + $0x68] sm:$0xff] }
 0x1c9   : > { %v1521_v57 = vpop.permute.xlu1 %1520  ;;  %1411 = vst.msk [vmem:[#allocation2 + $0x78] sm:$0xff] %vm1395_vm7, %v1330_v31  ;;  %2711 = vmatmul.mubr.msk.f32.gmra.mrb[12].mxu0 %vm1851_vm10, %v1827_v0  ;;  %v2574_v31 = vld [vmem:[%s3027_s30 + $0x199] sm:$0xff] }
 0x1ca   : > { %1603 = vst.msk [vmem:[#allocation2 + $0x70] sm:$0xff] %vm1588_vm8, %v1521_v57  ;;  %1347 = vrot.lane.b32.xlu0 %v2536_v14, %s2941_s19  ;;  %v2575_v57 = vld [vmem:[%s3027_s30 + $0x1a1] sm:$0xff] }
 0x1cb   : > { %771 = vrot.lane.b32.xlu1 %v2536_v14, %s2938_s6 }
 0x1cc   : > { %v754_v50 = vpop.permute.xlu0 %753 }
 0x1cd   : > { %v945_v51 = vpop.permute.xlu1 %944  ;;  %833 = vst.msk [vmem:[#allocation2 + $0x88] sm:$0xff] %vm815_vm4, %v754_v50  ;;  %v2607_v50 = vld [vmem:[%s3027_s30 + $0x1a2] sm:$0xff] }
 0x1ce   : > { %1025 = vst.msk [vmem:[#allocation2 + $0x80] sm:$0xff] %vm1008_vm5, %v945_v51  ;;  %1349 = vrot.lane.b32.xlu0 %v2537_v15, %s2941_s19 }
 0x1cf   : > { %1540 = vrot.lane.b32.xlu1 %v2568_v39, %s2942_s28 }
 0x1d0   : > { %v1523_v2 = vpop.permute.xlu0 %1522 }
 0x1d1   : > { %v1714_v32 = vpop.permute.xlu1 %1713  ;;  %1604 = vst.msk [vmem:[#allocation2 + $0x78] sm:$0xff] %vm1588_vm8, %v1523_v2 }
 0x1d2   : > { %1796 = vst.msk [vmem:[#allocation2 + $0x70] sm:$0xff] %vm1781_vm9, %v1714_v32  ;;  %773 = vrot.lane.b32.xlu0 %v2537_v15, %s2938_s6 }
 0x1d3   : > { %964 = vrot.lane.b32.xlu1 %v2568_v39, %s2939_s7  ;;  %v2606_v39 = vld [vmem:[%s3027_s30 + $0x19a] sm:$0xff]  ;;  %s4029_s30 = sand.u32 1, %s2918_s13  }
 0x1d4   : > { %v947_v30 = vpop.permute.xlu0 %946  ;;  %s2290_s26 = scalar_lea.sflag [#allocation4], %s4029_s30 }
 0x1d5   : > { %v1138_v18 = vpop.permute.xlu1 %1137  ;;  %1026 = vst.msk [vmem:[#allocation2 + $0x88] sm:$0xff] %vm1008_vm5, %v947_v30 }
 0x1d6   : > { %1218 = vst.msk [vmem:[#allocation2 + $0x80] sm:$0xff] %vm1201_vm6, %v1138_v18  ;;  %1542 = vrot.lane.b32.xlu0 %v2569_v5, %s2942_s28 }
 0x1d7   : > { %1733 = vrot.lane.b32.xlu1 %v2600_v29, %s2943_s29 }
 0x1d8   : > { %v1716_v33 = vpop.permute.xlu0 %1715 }
 0x1d9   : > { %v1140_v58 = vpop.permute.xlu1 %1139  ;;  %v1828_v40 = vld [vmem:[#allocation2 + $0x70] sm:$0xff]  ;;  %1797 = vst.msk [vmem:[#allocation2 + $0x78] sm:$0xff] %vm1781_vm9, %v1716_v33 }
 0x1da   : > { %1219 = vst.msk [vmem:[#allocation2 + $0x88] sm:$0xff] %vm1201_vm6, %v1140_v58  ;;  %2713 = vmatprep.mubr.msk.f32.mxu0 %vm1851_vm10, %v1828_v40  ;;  %966 = vrot.lane.b32.xlu0 %v2569_v5, %s2939_s7 }
 0x1db   : > { %1157 = vrot.lane.b32.xlu1 %v2600_v29, %s2940_s8 }
 0x1dc   : > { %v1332_v21 = vpop.permute.xlu0 %1331 }
 0x1dd   : > { %v756_v52 = vpop.permute.xlu1 %755  ;;  %1412 = vst.msk [vmem:[#allocation2 + $0x80] sm:$0xff] %vm1395_vm7, %v1332_v21 }
 0x1de   : > { %834 = vst.msk [vmem:[#allocation2 + $0x90] sm:$0xff] %vm815_vm4, %v756_v52  ;;  %1735 = vrot.lane.b32.xlu0 %v2601_v22, %s2943_s29 }
 0x1df   : > { %1159 = vrot.lane.b32.xlu1 %v2601_v22, %s2940_s8 }
 0x1e0   : > { %v1334_v6 = vpop.permute.xlu0 %1333  ;;  %v1829_v41 = vld [vmem:[#allocation2 + $0x78] sm:$0xff] }
 0x1e1   : > { %v1525_v53 = vpop.permute.xlu1 %1524  ;;  %1413 = vst.msk [vmem:[#allocation2 + $0x88] sm:$0xff] %vm1395_vm7, %v1334_v6  ;;  %2714 = vmatmul.mubr.msk.f32.gmra.mrb[14].mxu0 %vm1851_vm10, %v1829_v41 }
 0x1e2   : > { %1605 = vst.msk [vmem:[#allocation2 + $0x80] sm:$0xff] %vm1588_vm8, %v1525_v53  ;;  %1351 = vrot.lane.b32.xlu0 %v2538_v23, %s2941_s19 }
 0x1e3   : > { %775 = vrot.lane.b32.xlu1 %v2538_v23, %s2938_s6 }
 0x1e4   : > { %v758_v1 = vpop.permute.xlu0 %757 }
 0x1e5   : > { %v949_v3 = vpop.permute.xlu1 %948  ;;  %835 = vst.msk [vmem:[#allocation2 + $0x98] sm:$0xff] %vm815_vm4, %v758_v1 }
 0x1e6   : > { %1027 = vst.msk [vmem:[#allocation2 + $0x90] sm:$0xff] %vm1008_vm5, %v949_v3  ;;  %1353 = vrot.lane.b32.xlu0 %v2539_v59, %s2941_s19 }
 0x1e7   : > { %1544 = vrot.lane.b32.xlu1 %v2570_v34, %s2942_s28 }
 0x1e8   : > { %v1527_v7 = vpop.permute.xlu0 %1526 }
 0x1e9   : > { %v1718_v42 = vpop.permute.xlu1 %1717  ;;  %1606 = vst.msk [vmem:[#allocation2 + $0x88] sm:$0xff] %vm1588_vm8, %v1527_v7 }
 0x1ea   : > { %1798 = vst.msk [vmem:[#allocation2 + $0x80] sm:$0xff] %vm1781_vm9, %v1718_v42  ;;  %777 = vrot.lane.b32.xlu0 %v2539_v59, %s2938_s6 }
 0x1eb   : > { %968 = vrot.lane.b32.xlu1 %v2570_v34, %s2939_s7 }
 0x1ec   : > { %v951_v60 = vpop.permute.xlu0 %950 }
 0x1ed   : > { %v1142_v24 = vpop.permute.xlu1 %1141  ;;  %1028 = vst.msk [vmem:[#allocation2 + $0x98] sm:$0xff] %vm1008_vm5, %v951_v60 }
 0x1ee   : > { %1220 = vst.msk [vmem:[#allocation2 + $0x90] sm:$0xff] %vm1201_vm6, %v1142_v24  ;;  %1546 = vrot.lane.b32.xlu0 %v2571_v43, %s2942_s28 }
 0x1ef   : > { %1737 = vrot.lane.b32.xlu1 %v2602_v35, %s2943_s29 }
 0x1f0   : > { %v1720_v44 = vpop.permute.xlu0 %1719 }
 0x1f1   : > { %v1144_v25 = vpop.permute.xlu1 %1143  ;;  %v1830_v8 = vld [vmem:[#allocation2 + $0x80] sm:$0xff]  ;;  %1799 = vst.msk [vmem:[#allocation2 + $0x88] sm:$0xff] %vm1781_vm9, %v1720_v44 }
 0x1f2   : > { %1221 = vst.msk [vmem:[#allocation2 + $0x98] sm:$0xff] %vm1201_vm6, %v1144_v25  ;;  %2716 = vmatprep.mubr.msk.f32.mxu1 %vm1851_vm10, %v1830_v8  ;;  %970 = vrot.lane.b32.xlu0 %v2571_v43, %s2939_s7 }
 0x1f3   : > { %1161 = vrot.lane.b32.xlu1 %v2602_v35, %s2940_s8 }
 0x1f4   : > { %v1336_v12 = vpop.permute.xlu0 %1335 }
 0x1f5   : > { %v760_v55 = vpop.permute.xlu1 %759  ;;  %1414 = vst.msk [vmem:[#allocation2 + $0x90] sm:$0xff] %vm1395_vm7, %v1336_v12 }
 0x1f6   : > { %836 = vst.msk [vmem:[#allocation2 + $0xa0] sm:$0xff] %vm815_vm4, %v760_v55  ;;  %1739 = vrot.lane.b32.xlu0 %v2603_v54, %s2943_s29 }
 0x1f7   : > { %1163 = vrot.lane.b32.xlu1 %v2603_v54, %s2940_s8 }
 0x1f8   : > { %v1338_v45 = vpop.permute.xlu0 %1337  ;;  %v1831_v9 = vld [vmem:[#allocation2 + $0x88] sm:$0xff] }
 0x1f9   : > { %v1529_v61 = vpop.permute.xlu1 %1528  ;;  %1415 = vst.msk [vmem:[#allocation2 + $0x98] sm:$0xff] %vm1395_vm7, %v1338_v45  ;;  %2717 = vmatmul.mubr.msk.f32.vlgmr.msra.gmra.mrb[0].mxu1 %vm1851_vm10, %v1831_v9 }
 0x1fa   : > { %1607 = vst.msk [vmem:[#allocation2 + $0x90] sm:$0xff] %vm1588_vm8, %v1529_v61  ;;  %1355 = vrot.lane.b32.xlu0 %v2540_v16, %s2941_s19 }
 0x1fb   : > { %779 = vrot.lane.b32.xlu1 %v2540_v16, %s2938_s6 }
 0x1fc   : > { %v762_v47 = vpop.permute.xlu0 %761 }
 0x1fd   : > { %v953_v13 = vpop.permute.xlu1 %952  ;;  %837 = vst.msk [vmem:[#allocation2 + $0xa8] sm:$0xff] %vm815_vm4, %v762_v47 }
 0x1fe   : > { %1029 = vst.msk [vmem:[#allocation2 + $0xa0] sm:$0xff] %vm1008_vm5, %v953_v13  ;;  %1357 = vrot.lane.b32.xlu0 %v2541_v36, %s2941_s19 }
 0x1ff   : > { %1548 = vrot.lane.b32.xlu1 %v2572_v46, %s2942_s28 }
 0x200   : > { %v1531_v26 = vpop.permute.xlu0 %1530 }
 0x201   : > { %v1722_v27 = vpop.permute.xlu1 %1721  ;;  %1608 = vst.msk [vmem:[#allocation2 + $0x98] sm:$0xff] %vm1588_vm8, %v1531_v26 }
 0x202   : > { %1800 = vst.msk [vmem:[#allocation2 + $0x90] sm:$0xff] %vm1781_vm9, %v1722_v27  ;;  %781 = vrot.lane.b32.xlu0 %v2541_v36, %s2938_s6  ;;  %s4032_s6 = scalar_lea.vmem [#allocation3], %s4029_s30 }
 0x203   : > { %972 = vrot.lane.b32.xlu1 %v2572_v46, %s2939_s7  ;;  %s2306_s9 = sshll.u32 %s4032_s6, 4  ;;  %s4049_s9 = int_to_ptr.vmem [resolvable:$true] %s2306_s9 }
 0x204   : > { %v955_v19 = vpop.permute.xlu0 %954  ;;  %s2824_s27 = scalar_lea.vmem %s4049_s9, 16 }
 0x205   : > { %v1146_v20 = vpop.permute.xlu1 %1145  ;;  %1030 = vst.msk [vmem:[#allocation2 + $0xa8] sm:$0xff] %vm1008_vm5, %v955_v19  ;;  %p2825_p12 = scmp.ne.s32.totalorder %s4049_s9, %s2824_s27 }
 0x206   : > { %1222 = vst.msk [vmem:[#allocation2 + $0xa0] sm:$0xff] %vm1201_vm6, %v1146_v20  ;;  %1550 = vrot.lane.b32.xlu0 %v2573_v37, %s2942_s28 }
 0x207   : > { %1741 = vrot.lane.b32.xlu1 %v2604_v10, %s2943_s29  ;;  %p2826_p13 = pnand %p2825_p12, %p3007_p4 }
 0x208   : > { %v1724_v17 = vpop.permute.xlu0 %1723 }
 0x209   : > { %v1148_v11 = vpop.permute.xlu1 %1147  ;;  %v1832_v48 = vld [vmem:[#allocation2 + $0x90] sm:$0xff]  ;;  %1801 = vst.msk [vmem:[#allocation2 + $0x98] sm:$0xff] %vm1781_vm9, %v1724_v17  ;;  %p2827_p0 = pneg %p2826_p13 }
 0x20a   : > { %1223 = vst.msk [vmem:[#allocation2 + $0xa8] sm:$0xff] %vm1201_vm6, %v1148_v11  ;;  %2719 = vmatprep.mubr.msk.f32.mxu1 %vm1851_vm10, %v1832_v48  ;;  %974 = vrot.lane.b32.xlu0 %v2573_v37, %s2939_s7  ;;  %s4036_s7 = scalar_lea.vmem [#allocation5], %s4029_s30 }
 0x20b   : > { %1165 = vrot.lane.b32.xlu1 %v2604_v10, %s2940_s8  ;;  %s2319_s10 = sshll.u32 %s4036_s7, 4  ;;  %s4057_s10 = int_to_ptr.vmem [resolvable:$true] %s2319_s10 }
 0x20c   : > { %v1340_v4 = vpop.permute.xlu0 %1339 }
 0x20d   : > { %v764_v28 = vpop.permute.xlu1 %763  ;;  %1416 = vst.msk [vmem:[#allocation2 + $0xa0] sm:$0xff] %vm1395_vm7, %v1340_v4 }
 0x20e   : > { %838 = vst.msk [vmem:[#allocation2 + $0xb0] sm:$0xff] %vm815_vm4, %v764_v28  ;;  %1743 = vrot.lane.b32.xlu0 %v2605_v49, %s2943_s29 }
 0x20f   : > { %1167 = vrot.lane.b32.xlu1 %v2605_v49, %s2940_s8  ;;  %s2641_s8 = sshll.u32 %s2926_s15, 4 }
 0x210   : > { %v1342_v38 = vpop.permute.xlu0 %1341  ;;  %v1833_v14 = vld [vmem:[#allocation2 + $0x98] sm:$0xff]  ;;  %s4055_s23 = scalar_lea.hbm %s4129_s3, %s2641_s8 }
 0x211   : > { %v1533_v56 = vpop.permute.xlu1 %1532  ;;  %1417 = vst.msk [vmem:[#allocation2 + $0xa8] sm:$0xff] %vm1395_vm7, %v1342_v38  ;;  %2720 = vmatmul.mubr.msk.f32.gmra.mrb[2].mxu1 %vm1851_vm10, %v1833_v14 }
 0x212   : > { %1609 = vst.msk [vmem:[#allocation2 + $0xa0] sm:$0xff] %vm1588_vm8, %v1533_v56  ;;  %1359 = vrot.lane.b32.xlu0 %v2542_v62, %s2941_s19 }
 0x213   : > { %1361 = vrot.lane.b32.xlu1 %v2543_v63, %s2941_s19  ;;  %s4047_s19 = scalar_lea.hbm %s4128_s2, %s2641_s8 }
 0x214   : > { %v766_v0 = vpop.permute.xlu0 %765 }
 0x215   : > { %v957_v15 = vpop.permute.xlu1 %956  ;;  %839 = vst.msk [vmem:[#allocation2 + $0xb8] sm:$0xff] %vm815_vm4, %v766_v0 }
 0x216   : > { %1031 = vst.msk [vmem:[#allocation2 + $0xb0] sm:$0xff] %vm1008_vm5, %v957_v15  ;;  %1552 = vrot.lane.b32.xlu0 %v2574_v31, %s2942_s28 }
 0x217   : > { %1554 = vrot.lane.b32.xlu1 %v2575_v57, %s2942_s28  ;;  %s2945_s28 = smov [#allocation3]  }
 0x218   : > { %v1535_v51 = vpop.permute.xlu0 %1534  ;;  %v2694_v2 = vpop.f32.mrb[0].mxu0 }
 0x219   : > { %1610 = vst.msk [vmem:[#allocation2 + $0xa8] sm:$0xff] %vm1588_vm8, %v1535_v51  ;;  %v2219_v32 = vmul.f32 %v2694_v2, %v2694_v2  ;;  %v1726_v5 = vpop.permute.xlu1 %1725  ;;  %v2018_v29 = vpop.f32.mrb[1].mxu0 }
 0x21a   : > { %1802 = vst.msk [vmem:[#allocation2 + $0xa0] sm:$0xff] %vm1781_vm9, %v1726_v5  ;;  %v2178_v30 = vadd.f32 %v2694_v2, %v2018_v29  ;;  %v2218_v18 = vmul.f32 %v2018_v29, %v2018_v29  ;;  %1745 = vrot.lane.b32.xlu0 %v2606_v39, %s2943_s29 }
 0x21b   : > { %1747 = vrot.lane.b32.xlu1 %v2607_v50, %s2943_s29  ;;  %s2828_s29 = sshll.u32 %s2945_s28, 4  ;;  %s2829_s29 = int_to_ptr.vmem [resolvable:$false] %s2828_s29 }
 0x21c   : > { %v2250_v33 = vadd.f32 %v2219_v32, %v2218_v18  ;;  %v959_v58 = vpop.permute.xlu0 %958  ;;  %s2830_s4 = scalar_lea.vmem %s2829_s29, 32  ;;  %p2831_p1 = scmp.lt.s32.totalorder %s4049_s9, %s2829_s29 }
 0x21d   : > { %1032 = vst.msk [vmem:[#allocation2 + $0xb8] sm:$0xff] %vm1008_vm5, %v959_v58  ;;  %v1150_v40 = vpop.permute.xlu1 %1149  ;;  %p2832_p2 = scmp.lt.s32.totalorder %s2830_s4, %s2824_s27 }
 0x21e   : > { %1224 = vst.msk [vmem:[#allocation2 + $0xb0] sm:$0xff] %vm1201_vm6, %v1150_v40 }
 0x21f   : > { %p2833_p3 = por %p2832_p2, %p2831_p1 }
 0x220   : > { %v1728_v22 = vpop.permute.xlu0 %1727 }
 0x221   : > { %1803 = vst.msk [vmem:[#allocation2 + $0xa8] sm:$0xff] %vm1781_vm9, %v1728_v22  ;;  %v1152_v21 = vpop.permute.xlu1 %1151  ;;  %v1834_v52 = vld [vmem:[#allocation2 + $0xa0] sm:$0xff]  ;;  %p2834_p5 = pnand %p2833_p3, %p2827_p0 }
 0x222   : > { %1225 = vst.msk [vmem:[#allocation2 + $0xb8] sm:$0xff] %vm1201_vm6, %v1152_v21  ;;  %2722 = vmatprep.mubr.msk.f32.mxu1 %vm1851_vm10, %v1834_v52 }
 0x224   : > { %v1344_v23 = vpop.permute.xlu0 %1343 }
 0x225   : > { %1418 = vst.msk [vmem:[#allocation2 + $0xb0] sm:$0xff] %vm1395_vm7, %v1344_v23  ;;  %v768_v6 = vpop.permute.xlu1 %767 }
 0x226   : > { %840 = vst.msk [vmem:[#allocation2 + $0xc0] sm:$0xff] %vm815_vm4, %v768_v6 }
 0x228   : > { %v1346_v53 = vpop.permute.xlu0 %1345  ;;  %v1835_v41 = vld [vmem:[#allocation2 + $0xa8] sm:$0xff] }
 0x229   : > { %1419 = vst.msk [vmem:[#allocation2 + $0xb8] sm:$0xff] %vm1395_vm7, %v1346_v53  ;;  %v1537_v59 = vpop.permute.xlu1 %1536  ;;  %2723 = vmatmul.mubr.msk.f32.gmra.mrb[4].mxu1 %vm1851_vm10, %v1835_v41 }
 0x22a   : > { %1611 = vst.msk [vmem:[#allocation2 + $0xb0] sm:$0xff] %vm1588_vm8, %v1537_v59 }
 0x22c   : > { %v770_v34 = vpop.permute.xlu0 %769  ;;  %v2697_v1 = vpop.f32.mrb[2].mxu0 }
 0x22d   : > { %841 = vst.msk [vmem:[#allocation2 + $0xc8] sm:$0xff] %vm815_vm4, %v770_v34  ;;  %v961_v3 = vpop.permute.xlu1 %960  ;;  %v2028_v7 = vpop.f32.mrb[3].mxu0  ;;  %v2221_v35 = vmul.f32 %v2697_v1, %v2697_v1 }
 0x22e   : > { %1033 = vst.msk [vmem:[#allocation2 + $0xc0] sm:$0xff] %vm1008_vm5, %v961_v3  ;;  %v2179_v42 = vadd.f32 %v2178_v30, %v2028_v7  ;;  %v2220_v43 = vmul.f32 %v2028_v7, %v2028_v7 }
 0x230   : > { %v2251_v60 = vadd.f32 %v2250_v33, %v2220_v43  ;;  %v1539_v24 = vpop.permute.xlu0 %1538  ;;  %v2180_v44 = vadd.f32 %v2697_v1, %v2179_v42 }
 0x231   : > { %1612 = vst.msk [vmem:[#allocation2 + $0xb8] sm:$0xff] %vm1588_vm8, %v1539_v24  ;;  %v1730_v25 = vpop.permute.xlu1 %1729 }
 0x232   : > { %1804 = vst.msk [vmem:[#allocation2 + $0xb0] sm:$0xff] %vm1781_vm9, %v1730_v25  ;;  %v2252_v8 = vadd.f32 %v2251_v60, %v2221_v35 }
 0x234   : > { %v963_v54 = vpop.permute.xlu0 %962 }
 0x235   : > { %1034 = vst.msk [vmem:[#allocation2 + $0xc8] sm:$0xff] %vm1008_vm5, %v963_v54  ;;  %v1154_v12 = vpop.permute.xlu1 %1153 }
 0x236   : > { %1226 = vst.msk [vmem:[#allocation2 + $0xc0] sm:$0xff] %vm1201_vm6, %v1154_v12 }
 0x238   : > { %v1732_v55 = vpop.permute.xlu0 %1731 }
 0x239   : > { %1805 = vst.msk [vmem:[#allocation2 + $0xb8] sm:$0xff] %vm1781_vm9, %v1732_v55  ;;  %v1156_v16 = vpop.permute.xlu1 %1155  ;;  %v1836_v45 = vld [vmem:[#allocation2 + $0xb0] sm:$0xff] }
 0x23a   : > { %1227 = vst.msk [vmem:[#allocation2 + $0xc8] sm:$0xff] %vm1201_vm6, %v1156_v16  ;;  %2725 = vmatprep.mubr.msk.f32.mxu1 %vm1851_vm10, %v1836_v45 }
 0x23c   : > { %v1348_v61 = vpop.permute.xlu0 %1347 }
 0x23d   : > { %1420 = vst.msk [vmem:[#allocation2 + $0xc0] sm:$0xff] %vm1395_vm7, %v1348_v61  ;;  %v772_v9 = vpop.permute.xlu1 %771 }
 0x23e   : > { %842 = vst.msk [vmem:[#allocation2 + $0xd0] sm:$0xff] %vm815_vm4, %v772_v9 }
 0x240   : > { %v1350_v36 = vpop.permute.xlu0 %1349  ;;  %v2700_v46 = vpop.f32.mrb[4].mxu0  ;;  %v1837_v47 = vld [vmem:[#allocation2 + $0xb8] sm:$0xff] }
 0x241   : > { %1421 = vst.msk [vmem:[#allocation2 + $0xc8] sm:$0xff] %vm1395_vm7, %v1350_v36  ;;  %v1541_v13 = vpop.permute.xlu1 %1540  ;;  %v2038_v26 = vpop.f32.mrb[5].mxu0  ;;  %2726 = vmatmul.mubr.msk.f32.gmra.mrb[6].mxu1 %vm1851_vm10, %v1837_v47  ;;  %v2223_v10 = vmul.f32 %v2700_v46, %v2700_v46 }
 0x242   : > { %1613 = vst.msk [vmem:[#allocation2 + $0xc0] sm:$0xff] %vm1588_vm8, %v1541_v13  ;;  %v2181_v27 = vadd.f32 %v2180_v44, %v2038_v26  ;;  %v2222_v37 = vmul.f32 %v2038_v26, %v2038_v26 }
 0x244   : > { %v2253_v19 = vadd.f32 %v2252_v8, %v2222_v37  ;;  %v774_v20 = vpop.permute.xlu0 %773  ;;  %v2182_v17 = vadd.f32 %v2700_v46, %v2181_v27 }
 0x245   : > { %843 = vst.msk [vmem:[#allocation2 + $0xd8] sm:$0xff] %vm815_vm4, %v774_v20  ;;  %v965_v11 = vpop.permute.xlu1 %964 }
 0x246   : > { %1035 = vst.msk [vmem:[#allocation2 + $0xd0] sm:$0xff] %vm1008_vm5, %v965_v11  ;;  %v2254_v48 = vadd.f32 %v2253_v19, %v2223_v10 }
 0x248   : > { %v1543_v49 = vpop.permute.xlu0 %1542 }
 0x249   : > { %1614 = vst.msk [vmem:[#allocation2 + $0xc8] sm:$0xff] %vm1588_vm8, %v1543_v49  ;;  %v1734_v4 = vpop.permute.xlu1 %1733 }
 0x24a   : > { %1806 = vst.msk [vmem:[#allocation2 + $0xc0] sm:$0xff] %vm1781_vm9, %v1734_v4 }
 0x24c   : > { %v967_v28 = vpop.permute.xlu0 %966 }
 0x24d   : > { %1036 = vst.msk [vmem:[#allocation2 + $0xd8] sm:$0xff] %vm1008_vm5, %v967_v28  ;;  %v1158_v62 = vpop.permute.xlu1 %1157 }
 0x24e   : > { %1228 = vst.msk [vmem:[#allocation2 + $0xd0] sm:$0xff] %vm1201_vm6, %v1158_v62 }
 0x250   : > { %v1736_v63 = vpop.permute.xlu0 %1735 }
 0x251   : > { %1807 = vst.msk [vmem:[#allocation2 + $0xc8] sm:$0xff] %vm1781_vm9, %v1736_v63  ;;  %v1160_v38 = vpop.permute.xlu1 %1159  ;;  %v1838_v56 = vld [vmem:[#allocation2 + $0xc0] sm:$0xff] }
 0x252   : > { %1229 = vst.msk [vmem:[#allocation2 + $0xd8] sm:$0xff] %vm1201_vm6, %v1160_v38  ;;  %2728 = vmatprep.mubr.msk.f32.mxu1 %vm1851_vm10, %v1838_v56 }
 0x254   : > { %v1352_v14 = vpop.permute.xlu0 %1351  ;;  %v2703_v31 = vpop.f32.mrb[6].mxu0 }
 0x255   : > { %1422 = vst.msk [vmem:[#allocation2 + $0xd0] sm:$0xff] %vm1395_vm7, %v1352_v14  ;;  %v776_v57 = vpop.permute.xlu1 %775  ;;  %v2048_v0 = vpop.f32.mrb[7].mxu0  ;;  %v2225_v50 = vmul.f32 %v2703_v31, %v2703_v31 }
 0x256   : > { %844 = vst.msk [vmem:[#allocation2 + $0xe0] sm:$0xff] %vm815_vm4, %v776_v57  ;;  %v2183_v15 = vadd.f32 %v2182_v17, %v2048_v0  ;;  %v2224_v39 = vmul.f32 %v2048_v0, %v2048_v0 }
 0x258   : > { %v2255_v51 = vadd.f32 %v2254_v48, %v2224_v39  ;;  %v1354_v2 = vpop.permute.xlu0 %1353  ;;  %v1839_v32 = vld [vmem:[#allocation2 + $0xc8] sm:$0xff]  ;;  %v2184_v5 = vadd.f32 %v2703_v31, %v2183_v15 }
 0x259   : > { %1423 = vst.msk [vmem:[#allocation2 + $0xd8] sm:$0xff] %vm1395_vm7, %v1354_v2  ;;  %v1545_v29 = vpop.permute.xlu1 %1544  ;;  %2729 = vmatmul.mubr.msk.f32.gmra.mrb[8].mxu1 %vm1851_vm10, %v1839_v32 }
 0x25a   : > { %1615 = vst.msk [vmem:[#allocation2 + $0xd0] sm:$0xff] %vm1588_vm8, %v1545_v29  ;;  %v2256_v30 = vadd.f32 %v2255_v51, %v2225_v50 }
 0x25c   : > { %v778_v18 = vpop.permute.xlu0 %777 }
 0x25d   : > { %845 = vst.msk [vmem:[#allocation2 + $0xe8] sm:$0xff] %vm815_vm4, %v778_v18  ;;  %v969_v33 = vpop.permute.xlu1 %968 }
 0x25e   : > { %1037 = vst.msk [vmem:[#allocation2 + $0xe0] sm:$0xff] %vm1008_vm5, %v969_v33 }
 0x260   : > { %v1547_v58 = vpop.permute.xlu0 %1546 }
 0x261   : > { %1616 = vst.msk [vmem:[#allocation2 + $0xd8] sm:$0xff] %vm1588_vm8, %v1547_v58  ;;  %v1738_v40 = vpop.permute.xlu1 %1737 }
 0x262   : > { %1808 = vst.msk [vmem:[#allocation2 + $0xd0] sm:$0xff] %vm1781_vm9, %v1738_v40 }
 0x264   : > { %v971_v22 = vpop.permute.xlu0 %970 }
 0x265   : > { %1038 = vst.msk [vmem:[#allocation2 + $0xe8] sm:$0xff] %vm1008_vm5, %v971_v22  ;;  %v1162_v21 = vpop.permute.xlu1 %1161 }
 0x266   : > { %1230 = vst.msk [vmem:[#allocation2 + $0xe0] sm:$0xff] %vm1201_vm6, %v1162_v21 }
 0x268   : > { %v1740_v52 = vpop.permute.xlu0 %1739 }
 0x269   : > { %1809 = vst.msk [vmem:[#allocation2 + $0xd8] sm:$0xff] %vm1781_vm9, %v1740_v52  ;;  %v1164_v23 = vpop.permute.xlu1 %1163  ;;  %v1840_v6 = vld [vmem:[#allocation2 + $0xd0] sm:$0xff] }
 0x26a   : > { %1231 = vst.msk [vmem:[#allocation2 + $0xe8] sm:$0xff] %vm1201_vm6, %v1164_v23  ;;  %2731 = vmatprep.mubr.msk.f32.mxu1 %vm1851_vm10, %v1840_v6 }
 0x26c   : > { %v1356_v53 = vpop.permute.xlu0 %1355  ;;  %v2706_v41 = vpop.f32.mrb[8].mxu0 }
 0x26d   : > { %1424 = vst.msk [vmem:[#allocation2 + $0xe0] sm:$0xff] %vm1395_vm7, %v1356_v53  ;;  %v780_v59 = vpop.permute.xlu1 %779  ;;  %v2058_v34 = vpop.f32.mrb[9].mxu0  ;;  %v2227_v7 = vmul.f32 %v2706_v41, %v2706_v41 }
 0x26e   : > { %846 = vst.msk [vmem:[#allocation2 + $0xf0] sm:$0xff] %vm815_vm4, %v780_v59  ;;  %v2185_v1 = vadd.f32 %v2184_v5, %v2058_v34  ;;  %v2226_v3 = vmul.f32 %v2058_v34, %v2058_v34 }
 0x270   : > { %v2257_v42 = vadd.f32 %v2256_v30, %v2226_v3  ;;  %v1358_v43 = vpop.permute.xlu0 %1357  ;;  %v1841_v35 = vld [vmem:[#allocation2 + $0xd8] sm:$0xff]  ;;  %v2186_v60 = vadd.f32 %v2706_v41, %v2185_v1 }
 0x271   : > { %1425 = vst.msk [vmem:[#allocation2 + $0xe8] sm:$0xff] %vm1395_vm7, %v1358_v43  ;;  %v1549_v24 = vpop.permute.xlu1 %1548  ;;  %2732 = vmatmul.mubr.msk.f32.gmra.mrb[10].mxu1 %vm1851_vm10, %v1841_v35 }
 0x272   : > { %1617 = vst.msk [vmem:[#allocation2 + $0xe0] sm:$0xff] %vm1588_vm8, %v1549_v24  ;;  %v2258_v44 = vadd.f32 %v2257_v42, %v2227_v7  ;;  %v2944_v42 = vmov 0.0  }
 0x273   : > { %201 = vst [vmem:[%s4032_s6] sm:$0x1] %v2944_v42  ;;  %202 = vst [vmem:[%s4036_s7] sm:$0x1] %v2944_v42 }
 0x274   : > { %v782_v25 = vpop.permute.xlu0 %781 }
 0x275   : > { %847 = vst.msk [vmem:[#allocation2 + $0xf8] sm:$0xff] %vm815_vm4, %v782_v25  ;;  %v973_v8 = vpop.permute.xlu1 %972 }
 0x276   : > { %1039 = vst.msk [vmem:[#allocation2 + $0xf0] sm:$0xff] %vm1008_vm5, %v973_v8 }
 0x278   : > { %v1551_v54 = vpop.permute.xlu0 %1550 }
 0x279   : > { %1618 = vst.msk [vmem:[#allocation2 + $0xe8] sm:$0xff] %vm1588_vm8, %v1551_v54  ;;  %v1742_v12 = vpop.permute.xlu1 %1741 }
 0x27a   : > { %1810 = vst.msk [vmem:[#allocation2 + $0xe0] sm:$0xff] %vm1781_vm9, %v1742_v12 }
 0x27c   : > { %v975_v55 = vpop.permute.xlu0 %974 }
 0x27d   : > { %1040 = vst.msk [vmem:[#allocation2 + $0xf8] sm:$0xff] %vm1008_vm5, %v975_v55  ;;  %v1166_v16 = vpop.permute.xlu1 %1165 }
 0x27e   : > { %1232 = vst.msk [vmem:[#allocation2 + $0xf0] sm:$0xff] %vm1201_vm6, %v1166_v16 }
 0x280   : > { %v1744_v45 = vpop.permute.xlu0 %1743 }
 0x281   : > { %1811 = vst.msk [vmem:[#allocation2 + $0xe8] sm:$0xff] %vm1781_vm9, %v1744_v45  ;;  %v1168_v61 = vpop.permute.xlu1 %1167  ;;  %v1842_v9 = vld [vmem:[#allocation2 + $0xe0] sm:$0xff] }
 0x282   : > { %1233 = vst.msk [vmem:[#allocation2 + $0xf8] sm:$0xff] %vm1201_vm6, %v1168_v61  ;;  %2734 = vmatprep.mubr.msk.f32.mxu1 %vm1851_vm10, %v1842_v9 }
 0x284   : > { %v1360_v36 = vpop.permute.xlu0 %1359  ;;  %v2709_v46 = vpop.f32.mrb[10].mxu0 }
 0x285   : > { %1426 = vst.msk [vmem:[#allocation2 + $0xf0] sm:$0xff] %vm1395_vm7, %v1360_v36  ;;  %v1362_v47 = vpop.permute.xlu1 %1361  ;;  %v2068_v13 = vpop.f32.mrb[11].mxu0  ;;  %v2229_v37 = vmul.f32 %v2709_v46, %v2709_v46 }
 0x286   : > { %1427 = vst.msk [vmem:[#allocation2 + $0xf8] sm:$0xff] %vm1395_vm7, %v1362_v47  ;;  %v2187_v26 = vadd.f32 %v2186_v60, %v2068_v13  ;;  %v2228_v27 = vmul.f32 %v2068_v13, %v2068_v13 }
 0x288   : > { %v2259_v10 = vadd.f32 %v2258_v44, %v2228_v27  ;;  %v1553_v19 = vpop.permute.xlu0 %1552  ;;  %v1843_v20 = vld [vmem:[#allocation2 + $0xe8] sm:$0xff]  ;;  %v2188_v17 = vadd.f32 %v2709_v46, %v2187_v26 }
 0x289   : > { %1619 = vst.msk [vmem:[#allocation2 + $0xf0] sm:$0xff] %vm1588_vm8, %v1553_v19  ;;  %v1555_v11 = vpop.permute.xlu1 %1554  ;;  %2735 = vmatmul.mubr.msk.f32.gmra.mrb[12].mxu1 %vm1851_vm10, %v1843_v20 }
 0x28a   : > { %1620 = vst.msk [vmem:[#allocation2 + $0xf8] sm:$0xff] %vm1588_vm8, %v1555_v11  ;;  %v2260_v48 = vadd.f32 %v2259_v10, %v2229_v37 }
 0x28c   : > { %v1746_v49 = vpop.permute.xlu0 %1745 }
 0x28d   : > { %1812 = vst.msk [vmem:[#allocation2 + $0xf0] sm:$0xff] %vm1781_vm9, %v1746_v49  ;;  %v1748_v4 = vpop.permute.xlu1 %1747 }
 0x28e   : > { %1813 = vst.msk [vmem:[#allocation2 + $0xf8] sm:$0xff] %vm1781_vm9, %v1748_v4 }
 0x294   : > { %v1844_v28 = vld [vmem:[#allocation2 + $0xf0] sm:$0xff] }
 0x295   : > { %2737 = vmatprep.mubr.msk.f32.mxu1 %vm1851_vm10, %v1844_v28  ;;  %v1845_v62 = vld [vmem:[#allocation2 + $0xf8] sm:$0xff] }
 0x296   : > { %2738 = vmatmul.mubr.msk.f32.gmra.mrb[14].mxu1 %vm1851_vm10, %v1845_v62 }
 0x29c   : > { %v2712_v63 = vpop.f32.mrb[12].mxu0 }
 0x29d   : > { %v2078_v38 = vpop.f32.mrb[13].mxu0  ;;  %v2231_v31 = vmul.f32 %v2712_v63, %v2712_v63 }
 0x29e   : > { %v2189_v56 = vadd.f32 %v2188_v17, %v2078_v38  ;;  %v2230_v14 = vmul.f32 %v2078_v38, %v2078_v38 }
 0x2a0   : > { %v2261_v57 = vadd.f32 %v2260_v48, %v2230_v14  ;;  %v2190_v0 = vadd.f32 %v2712_v63, %v2189_v56 }
 0x2a2   : > { %v2262_v15 = vadd.f32 %v2261_v57, %v2231_v31 }
 0x2b4   : > { %v2715_v39 = vpop.f32.mrb[14].mxu0 }
 0x2b5   : > { %v2088_v50 = vpop.f32.mrb[15].mxu0  ;;  %v2233_v32 = vmul.f32 %v2715_v39, %v2715_v39 }
 0x2b6   : > { %v2191_v51 = vadd.f32 %v2190_v0, %v2088_v50  ;;  %v2232_v2 = vmul.f32 %v2088_v50, %v2088_v50 }
 0x2b8   : > { %v2192_v5 = vadd.f32 %v2715_v39, %v2191_v51  ;;  %v2263_v29 = vadd.f32 %v2262_v15, %v2232_v2 }
 0x2ba   : > { %v2264_v30 = vadd.f32 %v2263_v29, %v2233_v32 }
 0x2cc   : > { %v2718_v18 = vpop.f32.mrb[0].mxu1 }
 0x2cd   : > { %v2098_v33 = vpop.f32.mrb[1].mxu1  ;;  %v2235_v22 = vmul.f32 %v2718_v18, %v2718_v18 }
 0x2ce   : > { %v2193_v58 = vadd.f32 %v2192_v5, %v2098_v33  ;;  %v2234_v40 = vmul.f32 %v2098_v33, %v2098_v33 }
 0x2d0   : > { %v2265_v21 = vadd.f32 %v2264_v30, %v2234_v40  ;;  %v2194_v52 = vadd.f32 %v2718_v18, %v2193_v58 }
 0x2d2   : > { %v2266_v23 = vadd.f32 %v2265_v21, %v2235_v22 }
 0x2e4   : > { %v2721_v6 = vpop.f32.mrb[2].mxu1 }
 0x2e5   : > { %v2108_v53 = vpop.f32.mrb[3].mxu1  ;;  %v2237_v34 = vmul.f32 %v2721_v6, %v2721_v6 }
 0x2e6   : > { %v2195_v41 = vadd.f32 %v2194_v52, %v2108_v53  ;;  %v2236_v59 = vmul.f32 %v2108_v53, %v2108_v53 }
 0x2e8   : > { %v2267_v1 = vadd.f32 %v2266_v23, %v2236_v59  ;;  %v2196_v3 = vadd.f32 %v2721_v6, %v2195_v41  ;;  %v2177_v41 = vld [vmem:[%s4032_s6] sm:$0x1] }
 0x2ea   : > { %v2268_v7 = vadd.f32 %v2267_v1, %v2237_v34  ;;  %v2217_v1 = vld [vmem:[%s4036_s7] sm:$0x1] }
 0x2fc   : > { %v2724_v43 = vpop.f32.mrb[4].mxu1 }
 0x2fd   : > { %v2118_v35 = vpop.f32.mrb[5].mxu1  ;;  %v2239_v44 = vmul.f32 %v2724_v43, %v2724_v43 }
 0x2fe   : > { %v2197_v60 = vadd.f32 %v2196_v3, %v2118_v35  ;;  %v2238_v24 = vmul.f32 %v2118_v35, %v2118_v35 }
 0x300   : > { %v2269_v25 = vadd.f32 %v2268_v7, %v2238_v24  ;;  %v2198_v8 = vadd.f32 %v2724_v43, %v2197_v60 }
 0x302   : > { %v2270_v54 = vadd.f32 %v2269_v25, %v2239_v44 }
 0x314   : > { %v2727_v12 = vpop.f32.mrb[6].mxu1 }
 0x315   : > { %v2128_v55 = vpop.f32.mrb[7].mxu1  ;;  %v2241_v61 = vmul.f32 %v2727_v12, %v2727_v12 }
 0x316   : > { %v2199_v16 = vadd.f32 %v2198_v8, %v2128_v55  ;;  %v2240_v45 = vmul.f32 %v2128_v55, %v2128_v55 }
 0x318   : > { %v2271_v9 = vadd.f32 %v2270_v54, %v2240_v45  ;;  %v2200_v36 = vadd.f32 %v2727_v12, %v2199_v16 }
 0x31a   : > { %v2272_v46 = vadd.f32 %v2271_v9, %v2241_v61 }
 0x32c   : > { %v2730_v47 = vpop.f32.mrb[8].mxu1 }
 0x32d   : > { %v2138_v13 = vpop.f32.mrb[9].mxu1  ;;  %v2243_v37 = vmul.f32 %v2730_v47, %v2730_v47 }
 0x32e   : > { %v2201_v26 = vadd.f32 %v2200_v36, %v2138_v13  ;;  %v2242_v27 = vmul.f32 %v2138_v13, %v2138_v13 }
 0x330   : > { %v2273_v10 = vadd.f32 %v2272_v46, %v2242_v27  ;;  %v2202_v19 = vadd.f32 %v2730_v47, %v2201_v26 }
 0x332   : > { %v2274_v20 = vadd.f32 %v2273_v10, %v2243_v37 }
 0x344   : > { %v2733_v17 = vpop.f32.mrb[10].mxu1 }
 0x345   : > { %v2148_v11 = vpop.f32.mrb[11].mxu1  ;;  %v2245_v4 = vmul.f32 %v2733_v17, %v2733_v17 }
 0x346   : > { %v2203_v48 = vadd.f32 %v2202_v19, %v2148_v11  ;;  %v2244_v49 = vmul.f32 %v2148_v11, %v2148_v11 }
 0x348   : > { %v2275_v28 = vadd.f32 %v2274_v20, %v2244_v49  ;;  %v2204_v62 = vadd.f32 %v2733_v17, %v2203_v48 }
 0x34a   : > { %v2276_v63 = vadd.f32 %v2275_v28, %v2245_v4 }
 0x35c   : > { %v2736_v38 = vpop.f32.mrb[12].mxu1 }
 0x35d   : > { %v2158_v56 = vpop.f32.mrb[13].mxu1  ;;  %v2247_v57 = vmul.f32 %v2736_v38, %v2736_v38 }
 0x35e   : > { %v2205_v14 = vadd.f32 %v2204_v62, %v2158_v56  ;;  %v2246_v31 = vmul.f32 %v2158_v56, %v2158_v56 }
 0x360   : > { %v2277_v0 = vadd.f32 %v2276_v63, %v2246_v31  ;;  %v2206_v15 = vadd.f32 %v2736_v38, %v2205_v14 }
 0x362   : > { %v2278_v39 = vadd.f32 %v2277_v0, %v2247_v57 }
 0x369   : > { %v2739_v50 = vpop.f32.mrb[14].mxu1 }
 0x36a   : > { %v2168_v51 = vpop.f32.mrb[15].mxu1  ;;  %v2249_v5 = vmul.f32 %v2739_v50, %v2739_v50 }
 0x36b   : > { %v2207_v2 = vadd.f32 %v2206_v15, %v2168_v51  ;;  %v2248_v32 = vmul.f32 %v2168_v51, %v2168_v51 }
 0x36d   : > { %v2208_v29 = vadd.f32 %v2739_v50, %v2207_v2  ;;  %v2279_v30 = vadd.f32 %v2278_v39, %v2248_v32 }
 0x36f   : > { %v2209_v18 = vrot.slane %v2208_v29, 4  ;;  %v2280_v33 = vadd.f32 %v2279_v30, %v2249_v5 }
 0x371   : > { %v2210_v58 = vadd.f32 %v2209_v18, %v2208_v29  ;;  %v2281_v40 = vrot.slane %v2280_v33, 4 }
 0x373   : > { %v2211_v22 = vrot.slane %v2210_v58, 2  ;;  %v2282_v21 = vadd.f32 %v2281_v40, %v2280_v33 }
 0x375   : > { %v2212_v52 = vadd.f32 %v2211_v22, %v2210_v58  ;;  %v2283_v23 = vrot.slane %v2282_v21, 2 }
 0x377   : > { %v2213_v6 = vrot.slane %v2212_v52, 1  ;;  %v2284_v53 = vadd.f32 %v2283_v23, %v2282_v21 }
 0x379   : > { %v2214_v59 = vadd.f32 %v2213_v6, %v2212_v52  ;;  %v2285_v34 = vrot.slane %v2284_v53, 1 }
 0x37b   : > { %v2215_v3 = vadd.f32 %v2214_v59, %v2177_v41  ;;  %v2286_v7 = vadd.f32 %v2285_v34, %v2284_v53 }
 0x37d   : > { %2216 = vst [vmem:[%s4032_s6] sm:$0x1] %v2215_v3  ;;  %v2287_v42 = vadd.f32 %v2286_v7, %v2217_v1 }
 0x37e   : > { %2837 = shalt.err (!%p2834_p5)
}
 0x37f   : > { %s2838_s5 = scalar_lea.hbm %s4047_s19, 16  ;;  %s2842_s11 = scalar_lea.hbm %s4128_s2, 32 }
 0x380   : > { %p2839_p6 = scmp.ne.s32.totalorder %s4047_s19, %s2838_s5  ;;  %p2843_p10 = scmp.lt.u32.totalorder %s4047_s19, %s4128_s2 }
 0x381   : > { %p2844_p11 = scmp.lt.u32.totalorder %s2842_s11, %s2838_s5  ;;  %p2846_p13 = scmp.lt.u32.totalorder %s2838_s5, %s4047_s19 }
 0x382   : > { %p2840_p7 = pnand %p2839_p6, %p3007_p4 }
 0x383   : > { %p2845_p12 = por %p2844_p11, %p2843_p10 }
 0x384   : > { %p2841_p9 = pneg %p2840_p7 }
 0x385   : > { %p2847_p0 = por %p2846_p13, %p2845_p12 }
 0x387   : > { %p2848_p1 = pnand %p2847_p0, %p2841_p9 }
 0x389   : > { %2851 = shalt.err (!%p2848_p1)
}
 0x38a   : > { %2755 = dma.vmem_to_hbm [thread:$0]  (%p3007_p4), %s4049_s9, 16, %s4047_s19, %s2290_s26   ;;  %2288 = vst [vmem:[%s4036_s7] sm:$0x1] %v2287_v42 }
 0x38b   : > { %s2294_s21 = scalar_lea.sflag [#allocation6], %s4029_s30  ;;  %s2852_s27 = scalar_lea.vmem %s4057_s10, 16 }
 0x38c   : > { %p2853_p2 = scmp.ne.s32.totalorder %s4057_s10, %s2852_s27  ;;  %s2946_s28 = smov [#allocation5]  }
 0x38d   : > { %s2856_s29 = sshll.u32 %s2946_s28, 4  ;;  %s2857_s29 = int_to_ptr.vmem [resolvable:$false] %s2856_s29 }
 0x38e   : > { %p2854_p3 = pnand %p2853_p2, %p3007_p4  ;;  %s2858_s4 = scalar_lea.vmem %s2857_s29, 32 }
 0x38f   : > { %p2859_p6 = scmp.lt.s32.totalorder %s4057_s10, %s2857_s29  ;;  %p2860_p7 = scmp.lt.s32.totalorder %s2858_s4, %s2852_s27 }
 0x390   : > { %p2855_p5 = pneg %p2854_p3 }
 0x391   : > { %p2861_p9 = por %p2860_p7, %p2859_p6 }
 0x393   : > { %p2862_p10 = pnand %p2861_p9, %p2855_p5 }
 0x395   : > { %2865 = shalt.err (!%p2862_p10)
}
 0x396   : > { %s2866_s30 = scalar_lea.hbm %s4055_s23, 16  ;;  %s2870_s19 = scalar_lea.hbm %s4129_s3, 32 }
 0x397   : > { %p2867_p11 = scmp.ne.s32.totalorder %s4055_s23, %s2866_s30  ;;  %p2871_p0 = scmp.lt.u32.totalorder %s4055_s23, %s4129_s3 }
 0x398   : > { %p2872_p1 = scmp.lt.u32.totalorder %s2870_s19, %s2866_s30  ;;  %p2874_p3 = scmp.lt.u32.totalorder %s2866_s30, %s4055_s23 }
 0x399   : > { %p2868_p12 = pnand %p2867_p11, %p3007_p4 }
 0x39a   : > { %p2873_p2 = por %p2872_p1, %p2871_p0 }
 0x39b   : > { %p2869_p13 = pneg %p2868_p12 }
 0x39c   : > { %p2875_p5 = por %p2874_p3, %p2873_p2 }
 0x39e   : > { %p2876_p6 = pnand %p2875_p5, %p2869_p13 }
 0x3a0   : > { %2879 = shalt.err (!%p2876_p6)
}
 0x3a1   : > { %2756 = dma.vmem_to_hbm [thread:$0]  (%p3007_p4), %s4057_s10, 16, %s4055_s23, %s2294_s21  }
 0x3a2 PF: > { %p2766_p7 = scmp.ge.s32.totalorder %s2934_s17, 2  ;;  %s2331_s6 = sand.u32 1, %s2914_s12  }
 0x3a3   : > { %s2332_s8 = scalar_lea.sflag [#allocation4], %s2331_s6 }
 0x3a4   : > { %p2760_p9 = pnand %p2766_p7, %p3014_p8 }
 0x3a6   : > { %2905 = dma.done.wait (!%p2760_p9), %s2332_s8, 16  }
 0x3a7   : > { %2907 = vsyncadd (!%p2760_p9), %s2332_s8, 4294967280  ;;  %s2340_s11 = scalar_lea.sflag [#allocation6], %s2331_s6 }
 0x3a8   : > { %2909 = dma.done.wait (!%p2760_p9), %s2340_s11, 16  }
 0x3a9   : > { %2911 = vsyncadd (!%p2760_p9), %s2340_s11, 4294967280  ;;  %s20_s17 = sadd.s32 1, %s2934_s17   ;;  %s4132_s12 = smov %s2918_s13 }
 0x3aa   : > { %p17_p10 = scmp.ge.s32.totalorder %s20_s17, 4   ;;  %s4133_s13 = smov %s2922_s14 }
 0x3ab   : > { %s4134_s14 = smov %s3020_s25  ;;  %s4135_s15 = smov %s2930_s16 }
 0x3ac   : > { %s4136_s16 = smov %s4138_s20  ;;  %19 = sbr.rel (!%p17_p10) target bundleno = 6 (0x6), region = 86 }
 0x3b3   :  { %2344 = vsyncpa [#allocation4], 1 }
 0x3b4   :  { %2346 = vsyncpa [#allocation4 + $0x1], 1 }
 0x3b5   :  { %2347 = vsyncpa [#allocation6], 1 }
 0x3b6   :  { %2349 = vsyncpa [#allocation6 + $0x1], 1 }

</bundles_post_ra>
